<compile_context>
chip_gen: v5e
topology: v5e:2x2
jax: 0.10.0
libtpu: 0.0.40
codegen_flags: <defaults>
</compile_context>

<pallas_src>
import math
from functools import partial

import jax
import jax.numpy as jnp
from jax import lax
from jax.experimental import pallas as pl
from jax.experimental.pallas import tpu as pltpu


# ------------------------- small matmul helpers -------------------------

def _dot_nn(a, b):
    """a @ b with f32 accumulation (a: (m, k), b: (k, n))."""
    return lax.dot_general(a, b, (((1,), (0,)), ((), ())),
                           preferred_element_type=jnp.float32)


def _dot_nt(a, b):
    """a @ b.T with f32 accumulation, without materializing the transpose."""
    return lax.dot_general(a, b, (((1,), (1,)), ((), ())),
                           preferred_element_type=jnp.float32)


# ------------------------- fused decoder-layer kernel -------------------------

def _decoder_layer_kernel(
    # activations (batch-major, flattened to (B*L, D))
    tgt_ref, mem_ref, pos_ref, qpos_ref, qsine_ref,
    # --- self attention ---
    w_sa_tgt_ref, b_sa_tgt_ref,       # (d, 3d) [qcontent|kcontent|v], (1, 3d)
    w_sa_qp_ref, b_sa_qp_ref,         # (d, 3d) [qpos|kpos|0],         (1, 3d)
    w_sa_out_ref, b_sa_out_ref,       # (d, d), (1, d)
    n1g_ref, n1b_ref,                 # (1, d), (1, d)
    # --- cross attention (interleaved per-head layouts, built in wrapper) ---
    w_ca_q_ref, b_ca_q_ref,           # (d, 2d) qcontent -> content slots
    w_ca_qpos_ref, b_ca_qpos_ref,     # (d, 2d) qpos     -> content slots (or 0)
    w_ca_qsine_ref, b_ca_qsine_ref,   # (d, 2d) qpos_sine-> sine slots
    w_ca_mem_ref, b_ca_mem_ref,       # (d, 3d) [kcontent->content slots | v]
    w_ca_kpos_ref, b_ca_kpos_ref,     # (d, 3d) kpos -> pos (+content) slots | 0
    w_ca_out_ref, b_ca_out_ref,       # (d, d)
    n2g_ref, n2b_ref,
    # --- FFN ---
    w_ff1_ref, b_ff1_ref,             # (d, dff)
    w_ff2_ref, b_ff2_ref,             # (dff, d)
    n3g_ref, n3b_ref,
    # output
    out_ref,
    *, bs, nq, hw, d, nhead, use_ca_qpos):
    f32 = jnp.float32
    hd = d // nhead                       # per-head width of v and of each q/k part
    sa_scale = float(hd) ** -0.5          # self-attn head_dim  = d/nhead
    ca_scale = float(2 * hd) ** -0.5      # cross-attn head_dim = 2*d/nhead

    def linear(x, w_ref, b_ref):
        return _dot_nn(x, w_ref[...]) + b_ref[...]

    def add_layernorm(x, res, g_ref, b_ref):
        y = x + res
        mean = jnp.mean(y, axis=-1, keepdims=True)
        cen = y - mean
        var = jnp.mean(cen * cen, axis=-1, keepdims=True)
        return cen * lax.rsqrt(var + 1e-5) * g_ref[...] + b_ref[...]

    def softmax_rows(s):
        # NOTE: approx reciprocal (EUP slot) -> ~1e-4 rel. error vs exact divide.
        m = jnp.max(s, axis=-1, keepdims=True)
        p = jnp.exp(s - m)
        denom = jnp.sum(p, axis=-1, keepdims=True)
        return p * pl.reciprocal(denom, approx=True)

    def attention(q_all, q_off, k_all, k_off, v_all, v_off,
                  lq, lk, qk_hd, scale, w_out_ref, b_out_ref):
        # q_all: (bs*lq, *) with head h's q at columns [q_off + h*qk_hd, ...)
        # k_all: (bs*lk, *) with head h's k at columns [k_off + h*qk_hd, ...)
        # v_all: (bs*lk, *) with head h's v at columns [v_off + h*hd,   ...)
        # One score dot per (b, h); softmax batched across heads (sublane
        # stack); per-head P@V tiles lane-concatenated; single output
        # projection matmul + single bias add at the end.
        w_out = w_out_ref[...]            # hoisted: loaded once
        b_out = b_out_ref[...]
        outs = []
        for b in range(bs):
            s = jnp.concatenate(
                [_dot_nt(
                    q_all[b * lq:(b + 1) * lq,
                          q_off + h * qk_hd:q_off + (h + 1) * qk_hd],
                    k_all[b * lk:(b + 1) * lk,
                          k_off + h * qk_hd:k_off + (h + 1) * qk_hd])
                 for h in range(nhead)], axis=0)              # (nhead*lq, lk)
            p = softmax_rows(s * scale)
            o_b = jnp.concatenate(
                [_dot_nn(
                    p[h * lq:(h + 1) * lq, :],
                    v_all[b * lk:(b + 1) * lk,
                          v_off + h * hd:v_off + (h + 1) * hd])
                 for h in range(nhead)], axis=1)              # (lq, d)
            outs.append(o_b)
        o = jnp.concatenate(outs, axis=0)                     # (bs*lq, d)
        return _dot_nn(o, w_out) + b_out

    tgt = tgt_ref[...].astype(f32)
    mem = mem_ref[...].astype(f32)
    pos = pos_ref[...].astype(f32)
    qpos = qpos_ref[...].astype(f32)
    qsine = qsine_ref[...].astype(f32)

    # ---------------- self attention ----------------
    sa_t = linear(tgt, w_sa_tgt_ref, b_sa_tgt_ref)            # (bs*nq, 3d)
    sa_p = linear(qpos, w_sa_qp_ref, b_sa_qp_ref)             # (bs*nq, 3d), v third = 0
    qkv = sa_t + sa_p                                         # [q | k | v]
    tgt2 = attention(qkv, 0, qkv, d, qkv, 2 * d, nq, nq, hd,
                     sa_scale, w_sa_out_ref, b_sa_out_ref)
    # TODO(synk): dropout1 omitted (inference mode => identity)
    tgt = add_layernorm(tgt2, tgt, n1g_ref, n1b_ref)

    # ---------------- cross attention ----------------
    # Q comes out of the projections already in the per-head interleaved
    # [content | sine] layout (width 2d); K/V likewise in [K_interleaved | V]
    # layout (width 3d) -- the interleave lives in the wrapper-built weights.
    q_ca = linear(tgt, w_ca_q_ref, b_ca_q_ref)                # content slots
    if use_ca_qpos:
        q_ca = q_ca + linear(qpos, w_ca_qpos_ref, b_ca_qpos_ref)
    q_ca = q_ca + linear(qsine, w_ca_qsine_ref, b_ca_qsine_ref)   # sine slots
    kv = linear(mem, w_ca_mem_ref, b_ca_mem_ref)              # (bs*hw, 3d)
    kv = kv + linear(pos, w_ca_kpos_ref, b_ca_kpos_ref)       # kpos slots, v third = 0
    tgt2 = attention(q_ca, 0, kv, 0, kv, 2 * d, nq, hw, 2 * hd,
                     ca_scale, w_ca_out_ref, b_ca_out_ref)
    # TODO(synk): dropout2 omitted (inference mode => identity)
    tgt = add_layernorm(tgt2, tgt, n2g_ref, n2b_ref)

    # ---------------- feed forward ----------------
    h1 = jnp.maximum(linear(tgt, w_ff1_ref, b_ff1_ref), 0.0)
    tgt2 = linear(h1, w_ff2_ref, b_ff2_ref)
    # TODO(synk): dropout / dropout3 omitted (inference mode => identity)
    out_ref[...] = add_layernorm(tgt2, tgt, n3g_ref, n3b_ref).astype(out_ref.dtype)


# ------------------------- wrapper (layout plumbing only) -------------------------

def decoder_layer_forward(p, tgt, memory, pos, query_pos, query_sine_embed,
                          is_first=True, nhead=4, keep_query_pos=False):
    nq, bs, d = tgt.shape
    hw = memory.shape[0]
    hd = d // nhead
    dff = p["linear1_w"].shape[0]
    use_qpos = bool(is_first or keep_query_pos)
    dt = jnp.float32

    def bm(x):
        # (L, B, D) -> batch-major (B*L, D): per-(batch, head) attention slices
        # become contiguous static 2D blocks inside the kernel.
        l, b_, dd = x.shape
        return jnp.transpose(x, (1, 0, 2)).reshape(b_ * l, dd)

    def wt(name):
        # PyTorch nn.Linear weight (out, in) -> (in, out) so kernel does x @ W.
        return jnp.transpose(p[name + "_w"]).astype(dt)

    def bvec(name):
        return p[name + "_b"].astype(dt)

    def interleave_w(w_t, part):
        # Place (din, d) columns into the content (part=0) or sine/pos (part=1)
        # half of each head's 2*hd-wide slot of a (din, 2d) matrix.
        din = w_t.shape[0]
        out = jnp.zeros((din, nhead, 2, hd), dt)
        out = out.at[:, :, part, :].set(w_t.reshape(din, nhead, hd))
        return out.reshape(din, 2 * d)

    def interleave_b(b, part):
        out = jnp.zeros((nhead, 2, hd), dt)
        out = out.at[:, part, :].set(b.reshape(nhead, hd))
        return out.reshape(1, 2 * d)

    # ---- self-attention: batched projections; qpos/kpos zero-padded to 3d ----
    w_sa_tgt = jnp.concatenate([wt("sa_qcontent"), wt("sa_kcontent"), wt("sa_v")], axis=1)
    b_sa_tgt = jnp.concatenate([bvec("sa_qcontent"), bvec("sa_kcontent"), bvec("sa_v")])[None, :]
    w_sa_qp = jnp.concatenate([wt("sa_qpos"), wt("sa_kpos"), jnp.zeros((d, d), dt)], axis=1)
    b_sa_qp = jnp.concatenate([bvec("sa_qpos"), bvec("sa_kpos"), jnp.zeros((d,), dt)])[None, :]

    # ---- cross-attention: per-head interleaved weight layouts ----
    w_ca_q = interleave_w(wt("ca_qcontent"), 0)
    b_ca_q = interleave_b(bvec("ca_qcontent"), 0)
    if use_qpos:
        w_ca_qpos = interleave_w(wt("ca_qpos"), 0)
        b_ca_qpos = interleave_b(bvec("ca_qpos"), 0)
    else:
        w_ca_qpos = jnp.zeros((d, 2 * d), dt)
        b_ca_qpos = jnp.zeros((1, 2 * d), dt)
    w_ca_qsine = interleave_w(wt("ca_qpos_sine"), 1)
    b_ca_qsine = interleave_b(bvec("ca_qpos_sine"), 1)

    w_ca_mem = jnp.concatenate([interleave_w(wt("ca_kcontent"), 0), wt("ca_v")], axis=1)
    b_ca_mem = jnp.concatenate([interleave_b(bvec("ca_kcontent"), 0),
                                bvec("ca_v")[None, :]], axis=1)
    wkp, bkp = wt("ca_kpos"), bvec("ca_kpos")
    w_kp = interleave_w(wkp, 1)
    b_kp = interleave_b(bkp, 1)
    if use_qpos:                       # k = (k_content + k_pos) in content slots too
        w_kp = w_kp + interleave_w(wkp, 0)
        b_kp = b_kp + interleave_b(bkp, 0)
    w_ca_kpos = jnp.concatenate([w_kp, jnp.zeros((d, d), dt)], axis=1)
    b_ca_kpos = jnp.concatenate([b_kp, jnp.zeros((1, d), dt)], axis=1)

    args = [
        bm(tgt), bm(memory), bm(pos), bm(query_pos), bm(query_sine_embed),
        w_sa_tgt, b_sa_tgt, w_sa_qp, b_sa_qp,
        wt("sa_out"), bvec("sa_out")[None, :],
        p["norm1_g"][None, :], p["norm1_b"][None, :],
        w_ca_q, b_ca_q, w_ca_qpos, b_ca_qpos, w_ca_qsine, b_ca_qsine,
        w_ca_mem, b_ca_mem, w_ca_kpos, b_ca_kpos,
        wt("ca_out"), bvec("ca_out")[None, :],
        p["norm2_g"][None, :], p["norm2_b"][None, :],
        wt("linear1"), bvec("linear1")[None, :],
        wt("linear2"), bvec("linear2")[None, :],
        p["norm3_g"][None, :], p["norm3_b"][None, :],
    ]

    # Advisory cost estimate for XLA scheduling around the custom call.
    def mm_flops(m, k, n):
        return 2 * m * k * n
    ntq, ntk = bs * nq, bs * hw
    flops = (
        mm_flops(ntq, d, 3 * d) * 2
        + bs * nhead * (mm_flops(nq, hd, nq) + mm_flops(nq, nq, hd))
        + mm_flops(ntq, d, d)
        + mm_flops(ntq, d, 2 * d) * (3 if use_qpos else 2)
        + mm_flops(ntk, d, 3 * d) * 2
        + bs * nhead * (mm_flops(nq, 2 * hd, hw) + mm_flops(nq, hw, hd))
        + mm_flops(ntq, d, d)
        + mm_flops(ntq, d, dff) + mm_flops(ntq, dff, d)
    )
    transcendentals = bs * nhead * nq * (nq + hw)
    bytes_accessed = int(sum(int(a.size) * a.dtype.itemsize for a in args)
                         + ntq * d * jnp.dtype(tgt.dtype).itemsize)

    kernel = partial(_decoder_layer_kernel, bs=bs, nq=nq, hw=hw, d=d,
                     nhead=nhead, use_ca_qpos=use_qpos)

    out2d = pl.pallas_call(
        kernel,
        out_shape=jax.ShapeDtypeStruct((bs * nq, d), tgt.dtype),
        in_specs=[pl.BlockSpec(memory_space=pltpu.MemorySpace.VMEM)] * len(args),
        out_specs=pl.BlockSpec(memory_space=pltpu.MemorySpace.VMEM),
        cost_estimate=pl.CostEstimate(flops=int(flops),
                                      transcendentals=int(transcendentals),
                                      bytes_accessed=bytes_accessed),
    )(*args)

    # batch-major (B*nq, D) -> (nq, B, D)
    return jnp.transpose(out2d.reshape(bs, nq, d), (1, 0, 2))


# ------------------------- parameter init -------------------------

def init_params(key, d_model=32, nhead=4, dim_ffn=64):
    lin_shapes = [
        ("sa_qcontent", d_model, d_model), ("sa_qpos", d_model, d_model),
        ("sa_kcontent", d_model, d_model), ("sa_kpos", d_model, d_model),
        ("sa_v", d_model, d_model), ("sa_out", d_model, d_model),
        ("ca_qcontent", d_model, d_model), ("ca_qpos", d_model, d_model),
        ("ca_kcontent", d_model, d_model), ("ca_kpos", d_model, d_model),
        ("ca_v", d_model, d_model), ("ca_qpos_sine", d_model, d_model),
        ("ca_out", d_model, d_model),
        ("linear1", dim_ffn, d_model), ("linear2", d_model, dim_ffn),
    ]
    p = {}
    for i, (name, dout, din) in enumerate(lin_shapes):
        kw, kb = jax.random.split(jax.random.fold_in(key, i))
        bound = 1.0 / math.sqrt(din)
        p[name + "_w"] = jax.random.uniform(kw, (dout, din), jnp.float32, -bound, bound)
        p[name + "_b"] = jax.random.uniform(kb, (dout,), jnp.float32, -bound, bound)
    for n in ("norm1", "norm2", "norm3"):
        p[n + "_g"] = jnp.ones((d_model,), jnp.float32)
        p[n + "_b"] = jnp.zeros((d_model,), jnp.float32)
    return p


# ------------------------- main -------------------------

if __name__ == "__main__":
    d_model, nhead, dim_ffn = 32, 4, 64
    nq, hw, bs = 8, 16, 2

    key = jax.random.PRNGKey(0)
    params = init_params(jax.random.fold_in(key, 1234), d_model, nhead, dim_ffn)

    ks = jax.random.split(key, 5)
    tgt = jax.random.normal(ks[0], (nq, bs, d_model), jnp.float32)
    memory = jax.random.normal(ks[1], (hw, bs, d_model), jnp.float32)
    pos = jax.random.normal(ks[2], (hw, bs, d_model), jnp.float32)
    query_pos = jax.random.normal(ks[3], (nq, bs, d_model), jnp.float32)
    query_sine_embed = jax.random.normal(ks[4], (nq, bs, d_model), jnp.float32)

    out = decoder_layer_forward(params, tgt, memory, pos, query_pos,
                                query_sine_embed, is_first=True, nhead=nhead)
    jax.block_until_ready(out)
    assert out.shape == (nq, bs, d_model)
    assert bool(jnp.all(jnp.isfinite(out)))
    print("KERNEL_OK")
</pallas_src>

<mosaic_0001>
module attributes {stable_mosaic.version = 11 : i64} {
  func.func @_decoder_layer_kernel(%arg0: memref<16x32xf32, #tpu.memory_space<vmem>>, %arg1: memref<32x32xf32, #tpu.memory_space<vmem>>, %arg2: memref<32x32xf32, #tpu.memory_space<vmem>>, %arg3: memref<16x32xf32, #tpu.memory_space<vmem>>, %arg4: memref<16x32xf32, #tpu.memory_space<vmem>>, %arg5: memref<32x96xf32, #tpu.memory_space<vmem>>, %arg6: memref<1x96xf32, #tpu.memory_space<vmem>>, %arg7: memref<32x96xf32, #tpu.memory_space<vmem>>, %arg8: memref<1x96xf32, #tpu.memory_space<vmem>>, %arg9: memref<32x32xf32, #tpu.memory_space<vmem>>, %arg10: memref<1x32xf32, #tpu.memory_space<vmem>>, %arg11: memref<1x32xf32, #tpu.memory_space<vmem>>, %arg12: memref<1x32xf32, #tpu.memory_space<vmem>>, %arg13: memref<32x64xf32, #tpu.memory_space<vmem>>, %arg14: memref<1x64xf32, #tpu.memory_space<vmem>>, %arg15: memref<32x64xf32, #tpu.memory_space<vmem>>, %arg16: memref<1x64xf32, #tpu.memory_space<vmem>>, %arg17: memref<32x64xf32, #tpu.memory_space<vmem>>, %arg18: memref<1x64xf32, #tpu.memory_space<vmem>>, %arg19: memref<32x96xf32, #tpu.memory_space<vmem>>, %arg20: memref<1x96xf32, #tpu.memory_space<vmem>>, %arg21: memref<32x96xf32, #tpu.memory_space<vmem>>, %arg22: memref<1x96xf32, #tpu.memory_space<vmem>>, %arg23: memref<32x32xf32, #tpu.memory_space<vmem>>, %arg24: memref<1x32xf32, #tpu.memory_space<vmem>>, %arg25: memref<1x32xf32, #tpu.memory_space<vmem>>, %arg26: memref<1x32xf32, #tpu.memory_space<vmem>>, %arg27: memref<32x64xf32, #tpu.memory_space<vmem>>, %arg28: memref<1x64xf32, #tpu.memory_space<vmem>>, %arg29: memref<64x32xf32, #tpu.memory_space<vmem>>, %arg30: memref<1x32xf32, #tpu.memory_space<vmem>>, %arg31: memref<1x32xf32, #tpu.memory_space<vmem>>, %arg32: memref<1x32xf32, #tpu.memory_space<vmem>>, %arg33: memref<16x32xf32, #tpu.memory_space<vmem>>) attributes {dimension_semantics = [], scalar_prefetch = 0 : i64, scratch_operands = 0 : i64, tpu.core_type = #tpu.core_type<tc>} {
    %c0 = arith.constant 0 : index
    %c0_0 = arith.constant 0 : index
    %0 = vector.load %arg0[%c0, %c0_0] : memref<16x32xf32, #tpu.memory_space<vmem>>, vector<16x32xf32>
    %c0_1 = arith.constant 0 : index
    %c0_2 = arith.constant 0 : index
    %1 = vector.load %arg1[%c0_1, %c0_2] : memref<32x32xf32, #tpu.memory_space<vmem>>, vector<32x32xf32>
    %c0_3 = arith.constant 0 : index
    %c0_4 = arith.constant 0 : index
    %2 = vector.load %arg2[%c0_3, %c0_4] : memref<32x32xf32, #tpu.memory_space<vmem>>, vector<32x32xf32>
    %c0_5 = arith.constant 0 : index
    %c0_6 = arith.constant 0 : index
    %3 = vector.load %arg3[%c0_5, %c0_6] : memref<16x32xf32, #tpu.memory_space<vmem>>, vector<16x32xf32>
    %c0_7 = arith.constant 0 : index
    %c0_8 = arith.constant 0 : index
    %4 = vector.load %arg4[%c0_7, %c0_8] : memref<16x32xf32, #tpu.memory_space<vmem>>, vector<16x32xf32>
    %c0_9 = arith.constant 0 : index
    %c0_10 = arith.constant 0 : index
    %5 = vector.load %arg5[%c0_9, %c0_10] : memref<32x96xf32, #tpu.memory_space<vmem>>, vector<32x96xf32>
    %cst = arith.constant dense<0.000000e+00> : vector<16x96xf32>
    %6 = tpu.matmul %0, %5, %cst {dimension_numbers = #tpu.dot_dimension_numbers<[1], [0], [0], [1], [0, 0, 1, 1], [], []>} : vector<16x32xf32>, vector<32x96xf32>, vector<16x96xf32> -> vector<16x96xf32>
    %c0_11 = arith.constant 0 : index
    %c0_12 = arith.constant 0 : index
    %7 = vector.load %arg6[%c0_11, %c0_12] : memref<1x96xf32, #tpu.memory_space<vmem>>, vector<1x96xf32>
    %8 = vector.broadcast %7 : vector<1x96xf32> to vector<16x96xf32>
    %9 = arith.addf %6, %8 : vector<16x96xf32>
    %c0_13 = arith.constant 0 : index
    %c0_14 = arith.constant 0 : index
    %10 = vector.load %arg7[%c0_13, %c0_14] : memref<32x96xf32, #tpu.memory_space<vmem>>, vector<32x96xf32>
    %cst_15 = arith.constant dense<0.000000e+00> : vector<16x96xf32>
    %11 = tpu.matmul %3, %10, %cst_15 {dimension_numbers = #tpu.dot_dimension_numbers<[1], [0], [0], [1], [0, 0, 1, 1], [], []>} : vector<16x32xf32>, vector<32x96xf32>, vector<16x96xf32> -> vector<16x96xf32>
    %c0_16 = arith.constant 0 : index
    %c0_17 = arith.constant 0 : index
    %12 = vector.load %arg8[%c0_16, %c0_17] : memref<1x96xf32, #tpu.memory_space<vmem>>, vector<1x96xf32>
    %13 = vector.broadcast %12 : vector<1x96xf32> to vector<16x96xf32>
    %14 = arith.addf %11, %13 : vector<16x96xf32>
    %15 = arith.addf %9, %14 : vector<16x96xf32>
    %c0_18 = arith.constant 0 : index
    %c0_19 = arith.constant 0 : index
    %16 = vector.load %arg9[%c0_18, %c0_19] : memref<32x32xf32, #tpu.memory_space<vmem>>, vector<32x32xf32>
    %c0_20 = arith.constant 0 : index
    %c0_21 = arith.constant 0 : index
    %17 = vector.load %arg10[%c0_20, %c0_21] : memref<1x32xf32, #tpu.memory_space<vmem>>, vector<1x32xf32>
    %18 = vector.extract_strided_slice %15 {offsets = [0, 0], sizes = [8, 8], strides = [1, 1]} : vector<16x96xf32> to vector<8x8xf32>
    %19 = vector.extract_strided_slice %15 {offsets = [0, 32], sizes = [8, 8], strides = [1, 1]} : vector<16x96xf32> to vector<8x8xf32>
    %cst_22 = arith.constant dense<0.000000e+00> : vector<8x8xf32>
    %20 = tpu.matmul %18, %19, %cst_22 {dimension_numbers = #tpu.dot_dimension_numbers<[1], [1], [0], [0], [0, 0, 1, 0], [], []>} : vector<8x8xf32>, vector<8x8xf32>, vector<8x8xf32> -> vector<8x8xf32>
    %21 = vector.extract_strided_slice %15 {offsets = [0, 8], sizes = [8, 8], strides = [1, 1]} : vector<16x96xf32> to vector<8x8xf32>
    %22 = vector.extract_strided_slice %15 {offsets = [0, 40], sizes = [8, 8], strides = [1, 1]} : vector<16x96xf32> to vector<8x8xf32>
    %cst_23 = arith.constant dense<0.000000e+00> : vector<8x8xf32>
    %23 = tpu.matmul %21, %22, %cst_23 {dimension_numbers = #tpu.dot_dimension_numbers<[1], [1], [0], [0], [0, 0, 1, 0], [], []>} : vector<8x8xf32>, vector<8x8xf32>, vector<8x8xf32> -> vector<8x8xf32>
    %24 = vector.extract_strided_slice %15 {offsets = [0, 16], sizes = [8, 8], strides = [1, 1]} : vector<16x96xf32> to vector<8x8xf32>
    %25 = vector.extract_strided_slice %15 {offsets = [0, 48], sizes = [8, 8], strides = [1, 1]} : vector<16x96xf32> to vector<8x8xf32>
    %cst_24 = arith.constant dense<0.000000e+00> : vector<8x8xf32>
    %26 = tpu.matmul %24, %25, %cst_24 {dimension_numbers = #tpu.dot_dimension_numbers<[1], [1], [0], [0], [0, 0, 1, 0], [], []>} : vector<8x8xf32>, vector<8x8xf32>, vector<8x8xf32> -> vector<8x8xf32>
    %27 = vector.extract_strided_slice %15 {offsets = [0, 24], sizes = [8, 8], strides = [1, 1]} : vector<16x96xf32> to vector<8x8xf32>
    %28 = vector.extract_strided_slice %15 {offsets = [0, 56], sizes = [8, 8], strides = [1, 1]} : vector<16x96xf32> to vector<8x8xf32>
    %cst_25 = arith.constant dense<0.000000e+00> : vector<8x8xf32>
    %29 = tpu.matmul %27, %28, %cst_25 {dimension_numbers = #tpu.dot_dimension_numbers<[1], [1], [0], [0], [0, 0, 1, 0], [], []>} : vector<8x8xf32>, vector<8x8xf32>, vector<8x8xf32> -> vector<8x8xf32>
    %30 = tpu.concatenate %20, %23, %26, %29 in 0 : vector<8x8xf32>, vector<8x8xf32>, vector<8x8xf32>, vector<8x8xf32> -> vector<32x8xf32>
    %cst_26 = arith.constant 0.353553385 : f32
    %31 = vector.broadcast %cst_26 : f32 to vector<32x8xf32>
    %32 = arith.mulf %30, %31 : vector<32x8xf32>
    %cst_27 = arith.constant dense<0xFF800000> : vector<32xf32>
    %33 = vector.multi_reduction <maximumf>, %32, %cst_27 [1] : vector<32x8xf32> to vector<32xf32>
    %34 = vector.shape_cast %33 : vector<32xf32> to vector<32x1xf32>
    %35 = vector.broadcast %34 : vector<32x1xf32> to vector<32x8xf32>
    %36 = arith.subf %32, %35 : vector<32x8xf32>
    %37 = math.exp %36 : vector<32x8xf32>
    %cst_28 = arith.constant dense<0.000000e+00> : vector<32xf32>
    %38 = vector.multi_reduction <add>, %37, %cst_28 [1] : vector<32x8xf32> to vector<32xf32>
    %39 = vector.shape_cast %38 : vector<32xf32> to vector<32x1xf32>
    %40 = tpu.reciprocal %39 {approx = true} : vector<32x1xf32> -> vector<32x1xf32>
    %41 = vector.broadcast %40 : vector<32x1xf32> to vector<32x8xf32>
    %42 = arith.mulf %37, %41 : vector<32x8xf32>
    %43 = vector.extract_strided_slice %42 {offsets = [0, 0], sizes = [8, 8], strides = [1, 1]} : vector<32x8xf32> to vector<8x8xf32>
    %44 = vector.extract_strided_slice %15 {offsets = [0, 64], sizes = [8, 8], strides = [1, 1]} : vector<16x96xf32> to vector<8x8xf32>
    %cst_29 = arith.constant dense<0.000000e+00> : vector<8x8xf32>
    %45 = tpu.matmul %43, %44, %cst_29 {dimension_numbers = #tpu.dot_dimension_numbers<[1], [0], [0], [1], [0, 0, 1, 1], [], []>} : vector<8x8xf32>, vector<8x8xf32>, vector<8x8xf32> -> vector<8x8xf32>
    %46 = vector.extract_strided_slice %42 {offsets = [8, 0], sizes = [8, 8], strides = [1, 1]} : vector<32x8xf32> to vector<8x8xf32>
    %47 = vector.extract_strided_slice %15 {offsets = [0, 72], sizes = [8, 8], strides = [1, 1]} : vector<16x96xf32> to vector<8x8xf32>
    %cst_30 = arith.constant dense<0.000000e+00> : vector<8x8xf32>
    %48 = tpu.matmul %46, %47, %cst_30 {dimension_numbers = #tpu.dot_dimension_numbers<[1], [0], [0], [1], [0, 0, 1, 1], [], []>} : vector<8x8xf32>, vector<8x8xf32>, vector<8x8xf32> -> vector<8x8xf32>
    %49 = vector.extract_strided_slice %42 {offsets = [16, 0], sizes = [8, 8], strides = [1, 1]} : vector<32x8xf32> to vector<8x8xf32>
    %50 = vector.extract_strided_slice %15 {offsets = [0, 80], sizes = [8, 8], strides = [1, 1]} : vector<16x96xf32> to vector<8x8xf32>
    %cst_31 = arith.constant dense<0.000000e+00> : vector<8x8xf32>
    %51 = tpu.matmul %49, %50, %cst_31 {dimension_numbers = #tpu.dot_dimension_numbers<[1], [0], [0], [1], [0, 0, 1, 1], [], []>} : vector<8x8xf32>, vector<8x8xf32>, vector<8x8xf32> -> vector<8x8xf32>
    %52 = vector.extract_strided_slice %42 {offsets = [24, 0], sizes = [8, 8], strides = [1, 1]} : vector<32x8xf32> to vector<8x8xf32>
    %53 = vector.extract_strided_slice %15 {offsets = [0, 88], sizes = [8, 8], strides = [1, 1]} : vector<16x96xf32> to vector<8x8xf32>
    %cst_32 = arith.constant dense<0.000000e+00> : vector<8x8xf32>
    %54 = tpu.matmul %52, %53, %cst_32 {dimension_numbers = #tpu.dot_dimension_numbers<[1], [0], [0], [1], [0, 0, 1, 1], [], []>} : vector<8x8xf32>, vector<8x8xf32>, vector<8x8xf32> -> vector<8x8xf32>
    %55 = tpu.concatenate %45, %48, %51, %54 in 1 : vector<8x8xf32>, vector<8x8xf32>, vector<8x8xf32>, vector<8x8xf32> -> vector<8x32xf32>
    %56 = vector.extract_strided_slice %15 {offsets = [8, 0], sizes = [8, 8], strides = [1, 1]} : vector<16x96xf32> to vector<8x8xf32>
    %57 = vector.extract_strided_slice %15 {offsets = [8, 32], sizes = [8, 8], strides = [1, 1]} : vector<16x96xf32> to vector<8x8xf32>
    %cst_33 = arith.constant dense<0.000000e+00> : vector<8x8xf32>
    %58 = tpu.matmul %56, %57, %cst_33 {dimension_numbers = #tpu.dot_dimension_numbers<[1], [1], [0], [0], [0, 0, 1, 0], [], []>} : vector<8x8xf32>, vector<8x8xf32>, vector<8x8xf32> -> vector<8x8xf32>
    %59 = vector.extract_strided_slice %15 {offsets = [8, 8], sizes = [8, 8], strides = [1, 1]} : vector<16x96xf32> to vector<8x8xf32>
    %60 = vector.extract_strided_slice %15 {offsets = [8, 40], sizes = [8, 8], strides = [1, 1]} : vector<16x96xf32> to vector<8x8xf32>
    %cst_34 = arith.constant dense<0.000000e+00> : vector<8x8xf32>
    %61 = tpu.matmul %59, %60, %cst_34 {dimension_numbers = #tpu.dot_dimension_numbers<[1], [1], [0], [0], [0, 0, 1, 0], [], []>} : vector<8x8xf32>, vector<8x8xf32>, vector<8x8xf32> -> vector<8x8xf32>
    %62 = vector.extract_strided_slice %15 {offsets = [8, 16], sizes = [8, 8], strides = [1, 1]} : vector<16x96xf32> to vector<8x8xf32>
    %63 = vector.extract_strided_slice %15 {offsets = [8, 48], sizes = [8, 8], strides = [1, 1]} : vector<16x96xf32> to vector<8x8xf32>
    %cst_35 = arith.constant dense<0.000000e+00> : vector<8x8xf32>
    %64 = tpu.matmul %62, %63, %cst_35 {dimension_numbers = #tpu.dot_dimension_numbers<[1], [1], [0], [0], [0, 0, 1, 0], [], []>} : vector<8x8xf32>, vector<8x8xf32>, vector<8x8xf32> -> vector<8x8xf32>
    %65 = vector.extract_strided_slice %15 {offsets = [8, 24], sizes = [8, 8], strides = [1, 1]} : vector<16x96xf32> to vector<8x8xf32>
    %66 = vector.extract_strided_slice %15 {offsets = [8, 56], sizes = [8, 8], strides = [1, 1]} : vector<16x96xf32> to vector<8x8xf32>
    %cst_36 = arith.constant dense<0.000000e+00> : vector<8x8xf32>
    %67 = tpu.matmul %65, %66, %cst_36 {dimension_numbers = #tpu.dot_dimension_numbers<[1], [1], [0], [0], [0, 0, 1, 0], [], []>} : vector<8x8xf32>, vector<8x8xf32>, vector<8x8xf32> -> vector<8x8xf32>
    %68 = tpu.concatenate %58, %61, %64, %67 in 0 : vector<8x8xf32>, vector<8x8xf32>, vector<8x8xf32>, vector<8x8xf32> -> vector<32x8xf32>
    %cst_37 = arith.constant 0.353553385 : f32
    %69 = vector.broadcast %cst_37 : f32 to vector<32x8xf32>
    %70 = arith.mulf %68, %69 : vector<32x8xf32>
    %cst_38 = arith.constant dense<0xFF800000> : vector<32xf32>
    %71 = vector.multi_reduction <maximumf>, %70, %cst_38 [1] : vector<32x8xf32> to vector<32xf32>
    %72 = vector.shape_cast %71 : vector<32xf32> to vector<32x1xf32>
    %73 = vector.broadcast %72 : vector<32x1xf32> to vector<32x8xf32>
    %74 = arith.subf %70, %73 : vector<32x8xf32>
    %75 = math.exp %74 : vector<32x8xf32>
    %cst_39 = arith.constant dense<0.000000e+00> : vector<32xf32>
    %76 = vector.multi_reduction <add>, %75, %cst_39 [1] : vector<32x8xf32> to vector<32xf32>
    %77 = vector.shape_cast %76 : vector<32xf32> to vector<32x1xf32>
    %78 = tpu.reciprocal %77 {approx = true} : vector<32x1xf32> -> vector<32x1xf32>
    %79 = vector.broadcast %78 : vector<32x1xf32> to vector<32x8xf32>
    %80 = arith.mulf %75, %79 : vector<32x8xf32>
    %81 = vector.extract_strided_slice %80 {offsets = [0, 0], sizes = [8, 8], strides = [1, 1]} : vector<32x8xf32> to vector<8x8xf32>
    %82 = vector.extract_strided_slice %15 {offsets = [8, 64], sizes = [8, 8], strides = [1, 1]} : vector<16x96xf32> to vector<8x8xf32>
    %cst_40 = arith.constant dense<0.000000e+00> : vector<8x8xf32>
    %83 = tpu.matmul %81, %82, %cst_40 {dimension_numbers = #tpu.dot_dimension_numbers<[1], [0], [0], [1], [0, 0, 1, 1], [], []>} : vector<8x8xf32>, vector<8x8xf32>, vector<8x8xf32> -> vector<8x8xf32>
    %84 = vector.extract_strided_slice %80 {offsets = [8, 0], sizes = [8, 8], strides = [1, 1]} : vector<32x8xf32> to vector<8x8xf32>
    %85 = vector.extract_strided_slice %15 {offsets = [8, 72], sizes = [8, 8], strides = [1, 1]} : vector<16x96xf32> to vector<8x8xf32>
    %cst_41 = arith.constant dense<0.000000e+00> : vector<8x8xf32>
    %86 = tpu.matmul %84, %85, %cst_41 {dimension_numbers = #tpu.dot_dimension_numbers<[1], [0], [0], [1], [0, 0, 1, 1], [], []>} : vector<8x8xf32>, vector<8x8xf32>, vector<8x8xf32> -> vector<8x8xf32>
    %87 = vector.extract_strided_slice %80 {offsets = [16, 0], sizes = [8, 8], strides = [1, 1]} : vector<32x8xf32> to vector<8x8xf32>
    %88 = vector.extract_strided_slice %15 {offsets = [8, 80], sizes = [8, 8], strides = [1, 1]} : vector<16x96xf32> to vector<8x8xf32>
    %cst_42 = arith.constant dense<0.000000e+00> : vector<8x8xf32>
    %89 = tpu.matmul %87, %88, %cst_42 {dimension_numbers = #tpu.dot_dimension_numbers<[1], [0], [0], [1], [0, 0, 1, 1], [], []>} : vector<8x8xf32>, vector<8x8xf32>, vector<8x8xf32> -> vector<8x8xf32>
    %90 = vector.extract_strided_slice %80 {offsets = [24, 0], sizes = [8, 8], strides = [1, 1]} : vector<32x8xf32> to vector<8x8xf32>
    %91 = vector.extract_strided_slice %15 {offsets = [8, 88], sizes = [8, 8], strides = [1, 1]} : vector<16x96xf32> to vector<8x8xf32>
    %cst_43 = arith.constant dense<0.000000e+00> : vector<8x8xf32>
    %92 = tpu.matmul %90, %91, %cst_43 {dimension_numbers = #tpu.dot_dimension_numbers<[1], [0], [0], [1], [0, 0, 1, 1], [], []>} : vector<8x8xf32>, vector<8x8xf32>, vector<8x8xf32> -> vector<8x8xf32>
    %93 = tpu.concatenate %83, %86, %89, %92 in 1 : vector<8x8xf32>, vector<8x8xf32>, vector<8x8xf32>, vector<8x8xf32> -> vector<8x32xf32>
    %94 = tpu.concatenate %55, %93 in 0 : vector<8x32xf32>, vector<8x32xf32> -> vector<16x32xf32>
    %cst_44 = arith.constant dense<0.000000e+00> : vector<16x32xf32>
    %95 = tpu.matmul %94, %16, %cst_44 {dimension_numbers = #tpu.dot_dimension_numbers<[1], [0], [0], [1], [0, 0, 1, 1], [], []>} : vector<16x32xf32>, vector<32x32xf32>, vector<16x32xf32> -> vector<16x32xf32>
    %96 = vector.broadcast %17 : vector<1x32xf32> to vector<16x32xf32>
    %97 = arith.addf %95, %96 : vector<16x32xf32>
    %98 = arith.addf %97, %0 : vector<16x32xf32>
    %cst_45 = arith.constant dense<0.000000e+00> : vector<16xf32>
    %99 = vector.multi_reduction <add>, %98, %cst_45 [1] : vector<16x32xf32> to vector<16xf32>
    %100 = vector.shape_cast %99 : vector<16xf32> to vector<16x1xf32>
    %cst_46 = arith.constant 3.200000e+01 : f32
    %101 = vector.broadcast %cst_46 : f32 to vector<16x1xf32>
    %102 = arith.divf %100, %101 : vector<16x1xf32>
    %103 = vector.broadcast %102 : vector<16x1xf32> to vector<16x32xf32>
    %104 = arith.subf %98, %103 : vector<16x32xf32>
    %105 = arith.mulf %104, %104 : vector<16x32xf32>
    %cst_47 = arith.constant dense<0.000000e+00> : vector<16xf32>
    %106 = vector.multi_reduction <add>, %105, %cst_47 [1] : vector<16x32xf32> to vector<16xf32>
    %107 = vector.shape_cast %106 : vector<16xf32> to vector<16x1xf32>
    %cst_48 = arith.constant 3.200000e+01 : f32
    %108 = vector.broadcast %cst_48 : f32 to vector<16x1xf32>
    %109 = arith.divf %107, %108 : vector<16x1xf32>
    %cst_49 = arith.constant 9.99999974E-6 : f32
    %110 = vector.broadcast %cst_49 : f32 to vector<16x1xf32>
    %111 = arith.addf %109, %110 : vector<16x1xf32>
    %112 = math.rsqrt %111 : vector<16x1xf32>
    %113 = vector.broadcast %112 : vector<16x1xf32> to vector<16x32xf32>
    %114 = arith.mulf %104, %113 : vector<16x32xf32>
    %c0_50 = arith.constant 0 : index
    %c0_51 = arith.constant 0 : index
    %115 = vector.load %arg11[%c0_50, %c0_51] : memref<1x32xf32, #tpu.memory_space<vmem>>, vector<1x32xf32>
    %116 = vector.broadcast %115 : vector<1x32xf32> to vector<16x32xf32>
    %117 = arith.mulf %114, %116 : vector<16x32xf32>
    %c0_52 = arith.constant 0 : index
    %c0_53 = arith.constant 0 : index
    %118 = vector.load %arg12[%c0_52, %c0_53] : memref<1x32xf32, #tpu.memory_space<vmem>>, vector<1x32xf32>
    %119 = vector.broadcast %118 : vector<1x32xf32> to vector<16x32xf32>
    %120 = arith.addf %117, %119 : vector<16x32xf32>
    %c0_54 = arith.constant 0 : index
    %c0_55 = arith.constant 0 : index
    %121 = vector.load %arg13[%c0_54, %c0_55] : memref<32x64xf32, #tpu.memory_space<vmem>>, vector<32x64xf32>
    %cst_56 = arith.constant dense<0.000000e+00> : vector<16x64xf32>
    %122 = tpu.matmul %120, %121, %cst_56 {dimension_numbers = #tpu.dot_dimension_numbers<[1], [0], [0], [1], [0, 0, 1, 1], [], []>} : vector<16x32xf32>, vector<32x64xf32>, vector<16x64xf32> -> vector<16x64xf32>
    %c0_57 = arith.constant 0 : index
    %c0_58 = arith.constant 0 : index
    %123 = vector.load %arg14[%c0_57, %c0_58] : memref<1x64xf32, #tpu.memory_space<vmem>>, vector<1x64xf32>
    %124 = vector.broadcast %123 : vector<1x64xf32> to vector<16x64xf32>
    %125 = arith.addf %122, %124 : vector<16x64xf32>
    %c0_59 = arith.constant 0 : index
    %c0_60 = arith.constant 0 : index
    %126 = vector.load %arg15[%c0_59, %c0_60] : memref<32x64xf32, #tpu.memory_space<vmem>>, vector<32x64xf32>
    %cst_61 = arith.constant dense<0.000000e+00> : vector<16x64xf32>
    %127 = tpu.matmul %3, %126, %cst_61 {dimension_numbers = #tpu.dot_dimension_numbers<[1], [0], [0], [1], [0, 0, 1, 1], [], []>} : vector<16x32xf32>, vector<32x64xf32>, vector<16x64xf32> -> vector<16x64xf32>
    %c0_62 = arith.constant 0 : index
    %c0_63 = arith.constant 0 : index
    %128 = vector.load %arg16[%c0_62, %c0_63] : memref<1x64xf32, #tpu.memory_space<vmem>>, vector<1x64xf32>
    %129 = vector.broadcast %128 : vector<1x64xf32> to vector<16x64xf32>
    %130 = arith.addf %127, %129 : vector<16x64xf32>
    %131 = arith.addf %125, %130 : vector<16x64xf32>
    %c0_64 = arith.constant 0 : index
    %c0_65 = arith.constant 0 : index
    %132 = vector.load %arg17[%c0_64, %c0_65] : memref<32x64xf32, #tpu.memory_space<vmem>>, vector<32x64xf32>
    %cst_66 = arith.constant dense<0.000000e+00> : vector<16x64xf32>
    %133 = tpu.matmul %4, %132, %cst_66 {dimension_numbers = #tpu.dot_dimension_numbers<[1], [0], [0], [1], [0, 0, 1, 1], [], []>} : vector<16x32xf32>, vector<32x64xf32>, vector<16x64xf32> -> vector<16x64xf32>
    %c0_67 = arith.constant 0 : index
    %c0_68 = arith.constant 0 : index
    %134 = vector.load %arg18[%c0_67, %c0_68] : memref<1x64xf32, #tpu.memory_space<vmem>>, vector<1x64xf32>
    %135 = vector.broadcast %134 : vector<1x64xf32> to vector<16x64xf32>
    %136 = arith.addf %133, %135 : vector<16x64xf32>
    %137 = arith.addf %131, %136 : vector<16x64xf32>
    %c0_69 = arith.constant 0 : index
    %c0_70 = arith.constant 0 : index
    %138 = vector.load %arg19[%c0_69, %c0_70] : memref<32x96xf32, #tpu.memory_space<vmem>>, vector<32x96xf32>
    %cst_71 = arith.constant dense<0.000000e+00> : vector<32x96xf32>
    %139 = tpu.matmul %1, %138, %cst_71 {dimension_numbers = #tpu.dot_dimension_numbers<[1], [0], [0], [1], [0, 0, 1, 1], [], []>} : vector<32x32xf32>, vector<32x96xf32>, vector<32x96xf32> -> vector<32x96xf32>
    %c0_72 = arith.constant 0 : index
    %c0_73 = arith.constant 0 : index
    %140 = vector.load %arg20[%c0_72, %c0_73] : memref<1x96xf32, #tpu.memory_space<vmem>>, vector<1x96xf32>
    %141 = vector.broadcast %140 : vector<1x96xf32> to vector<32x96xf32>
    %142 = arith.addf %139, %141 : vector<32x96xf32>
    %c0_74 = arith.constant 0 : index
    %c0_75 = arith.constant 0 : index
    %143 = vector.load %arg21[%c0_74, %c0_75] : memref<32x96xf32, #tpu.memory_space<vmem>>, vector<32x96xf32>
    %cst_76 = arith.constant dense<0.000000e+00> : vector<32x96xf32>
    %144 = tpu.matmul %2, %143, %cst_76 {dimension_numbers = #tpu.dot_dimension_numbers<[1], [0], [0], [1], [0, 0, 1, 1], [], []>} : vector<32x32xf32>, vector<32x96xf32>, vector<32x96xf32> -> vector<32x96xf32>
    %c0_77 = arith.constant 0 : index
    %c0_78 = arith.constant 0 : index
    %145 = vector.load %arg22[%c0_77, %c0_78] : memref<1x96xf32, #tpu.memory_space<vmem>>, vector<1x96xf32>
    %146 = vector.broadcast %145 : vector<1x96xf32> to vector<32x96xf32>
    %147 = arith.addf %144, %146 : vector<32x96xf32>
    %148 = arith.addf %142, %147 : vector<32x96xf32>
    %c0_79 = arith.constant 0 : index
    %c0_80 = arith.constant 0 : index
    %149 = vector.load %arg23[%c0_79, %c0_80] : memref<32x32xf32, #tpu.memory_space<vmem>>, vector<32x32xf32>
    %c0_81 = arith.constant 0 : index
    %c0_82 = arith.constant 0 : index
    %150 = vector.load %arg24[%c0_81, %c0_82] : memref<1x32xf32, #tpu.memory_space<vmem>>, vector<1x32xf32>
    %151 = vector.extract_strided_slice %137 {offsets = [0, 0], sizes = [8, 16], strides = [1, 1]} : vector<16x64xf32> to vector<8x16xf32>
    %152 = vector.extract_strided_slice %148 {offsets = [0, 0], sizes = [16, 16], strides = [1, 1]} : vector<32x96xf32> to vector<16x16xf32>
    %cst_83 = arith.constant dense<0.000000e+00> : vector<8x16xf32>
    %153 = tpu.matmul %151, %152, %cst_83 {dimension_numbers = #tpu.dot_dimension_numbers<[1], [1], [0], [0], [0, 0, 1, 0], [], []>} : vector<8x16xf32>, vector<16x16xf32>, vector<8x16xf32> -> vector<8x16xf32>
    %154 = vector.extract_strided_slice %137 {offsets = [0, 16], sizes = [8, 16], strides = [1, 1]} : vector<16x64xf32> to vector<8x16xf32>
    %155 = vector.extract_strided_slice %148 {offsets = [0, 16], sizes = [16, 16], strides = [1, 1]} : vector<32x96xf32> to vector<16x16xf32>
    %cst_84 = arith.constant dense<0.000000e+00> : vector<8x16xf32>
    %156 = tpu.matmul %154, %155, %cst_84 {dimension_numbers = #tpu.dot_dimension_numbers<[1], [1], [0], [0], [0, 0, 1, 0], [], []>} : vector<8x16xf32>, vector<16x16xf32>, vector<8x16xf32> -> vector<8x16xf32>
    %157 = vector.extract_strided_slice %137 {offsets = [0, 32], sizes = [8, 16], strides = [1, 1]} : vector<16x64xf32> to vector<8x16xf32>
    %158 = vector.extract_strided_slice %148 {offsets = [0, 32], sizes = [16, 16], strides = [1, 1]} : vector<32x96xf32> to vector<16x16xf32>
    %cst_85 = arith.constant dense<0.000000e+00> : vector<8x16xf32>
    %159 = tpu.matmul %157, %158, %cst_85 {dimension_numbers = #tpu.dot_dimension_numbers<[1], [1], [0], [0], [0, 0, 1, 0], [], []>} : vector<8x16xf32>, vector<16x16xf32>, vector<8x16xf32> -> vector<8x16xf32>
    %160 = vector.extract_strided_slice %137 {offsets = [0, 48], sizes = [8, 16], strides = [1, 1]} : vector<16x64xf32> to vector<8x16xf32>
    %161 = vector.extract_strided_slice %148 {offsets = [0, 48], sizes = [16, 16], strides = [1, 1]} : vector<32x96xf32> to vector<16x16xf32>
    %cst_86 = arith.constant dense<0.000000e+00> : vector<8x16xf32>
    %162 = tpu.matmul %160, %161, %cst_86 {dimension_numbers = #tpu.dot_dimension_numbers<[1], [1], [0], [0], [0, 0, 1, 0], [], []>} : vector<8x16xf32>, vector<16x16xf32>, vector<8x16xf32> -> vector<8x16xf32>
    %163 = tpu.concatenate %153, %156, %159, %162 in 0 : vector<8x16xf32>, vector<8x16xf32>, vector<8x16xf32>, vector<8x16xf32> -> vector<32x16xf32>
    %cst_87 = arith.constant 2.500000e-01 : f32
    %164 = vector.broadcast %cst_87 : f32 to vector<32x16xf32>
    %165 = arith.mulf %163, %164 : vector<32x16xf32>
    %cst_88 = arith.constant dense<0xFF800000> : vector<32xf32>
    %166 = vector.multi_reduction <maximumf>, %165, %cst_88 [1] : vector<32x16xf32> to vector<32xf32>
    %167 = vector.shape_cast %166 : vector<32xf32> to vector<32x1xf32>
    %168 = vector.broadcast %167 : vector<32x1xf32> to vector<32x16xf32>
    %169 = arith.subf %165, %168 : vector<32x16xf32>
    %170 = math.exp %169 : vector<32x16xf32>
    %cst_89 = arith.constant dense<0.000000e+00> : vector<32xf32>
    %171 = vector.multi_reduction <add>, %170, %cst_89 [1] : vector<32x16xf32> to vector<32xf32>
    %172 = vector.shape_cast %171 : vector<32xf32> to vector<32x1xf32>
    %173 = tpu.reciprocal %172 {approx = true} : vector<32x1xf32> -> vector<32x1xf32>
    %174 = vector.broadcast %173 : vector<32x1xf32> to vector<32x16xf32>
    %175 = arith.mulf %170, %174 : vector<32x16xf32>
    %176 = vector.extract_strided_slice %175 {offsets = [0, 0], sizes = [8, 16], strides = [1, 1]} : vector<32x16xf32> to vector<8x16xf32>
    %177 = vector.extract_strided_slice %148 {offsets = [0, 64], sizes = [16, 8], strides = [1, 1]} : vector<32x96xf32> to vector<16x8xf32>
    %cst_90 = arith.constant dense<0.000000e+00> : vector<8x8xf32>
    %178 = tpu.matmul %176, %177, %cst_90 {dimension_numbers = #tpu.dot_dimension_numbers<[1], [0], [0], [1], [0, 0, 1, 1], [], []>} : vector<8x16xf32>, vector<16x8xf32>, vector<8x8xf32> -> vector<8x8xf32>
    %179 = vector.extract_strided_slice %175 {offsets = [8, 0], sizes = [8, 16], strides = [1, 1]} : vector<32x16xf32> to vector<8x16xf32>
    %180 = vector.extract_strided_slice %148 {offsets = [0, 72], sizes = [16, 8], strides = [1, 1]} : vector<32x96xf32> to vector<16x8xf32>
    %cst_91 = arith.constant dense<0.000000e+00> : vector<8x8xf32>
    %181 = tpu.matmul %179, %180, %cst_91 {dimension_numbers = #tpu.dot_dimension_numbers<[1], [0], [0], [1], [0, 0, 1, 1], [], []>} : vector<8x16xf32>, vector<16x8xf32>, vector<8x8xf32> -> vector<8x8xf32>
    %182 = vector.extract_strided_slice %175 {offsets = [16, 0], sizes = [8, 16], strides = [1, 1]} : vector<32x16xf32> to vector<8x16xf32>
    %183 = vector.extract_strided_slice %148 {offsets = [0, 80], sizes = [16, 8], strides = [1, 1]} : vector<32x96xf32> to vector<16x8xf32>
    %cst_92 = arith.constant dense<0.000000e+00> : vector<8x8xf32>
    %184 = tpu.matmul %182, %183, %cst_92 {dimension_numbers = #tpu.dot_dimension_numbers<[1], [0], [0], [1], [0, 0, 1, 1], [], []>} : vector<8x16xf32>, vector<16x8xf32>, vector<8x8xf32> -> vector<8x8xf32>
    %185 = vector.extract_strided_slice %175 {offsets = [24, 0], sizes = [8, 16], strides = [1, 1]} : vector<32x16xf32> to vector<8x16xf32>
    %186 = vector.extract_strided_slice %148 {offsets = [0, 88], sizes = [16, 8], strides = [1, 1]} : vector<32x96xf32> to vector<16x8xf32>
    %cst_93 = arith.constant dense<0.000000e+00> : vector<8x8xf32>
    %187 = tpu.matmul %185, %186, %cst_93 {dimension_numbers = #tpu.dot_dimension_numbers<[1], [0], [0], [1], [0, 0, 1, 1], [], []>} : vector<8x16xf32>, vector<16x8xf32>, vector<8x8xf32> -> vector<8x8xf32>
    %188 = tpu.concatenate %178, %181, %184, %187 in 1 : vector<8x8xf32>, vector<8x8xf32>, vector<8x8xf32>, vector<8x8xf32> -> vector<8x32xf32>
    %189 = vector.extract_strided_slice %137 {offsets = [8, 0], sizes = [8, 16], strides = [1, 1]} : vector<16x64xf32> to vector<8x16xf32>
    %190 = vector.extract_strided_slice %148 {offsets = [16, 0], sizes = [16, 16], strides = [1, 1]} : vector<32x96xf32> to vector<16x16xf32>
    %cst_94 = arith.constant dense<0.000000e+00> : vector<8x16xf32>
    %191 = tpu.matmul %189, %190, %cst_94 {dimension_numbers = #tpu.dot_dimension_numbers<[1], [1], [0], [0], [0, 0, 1, 0], [], []>} : vector<8x16xf32>, vector<16x16xf32>, vector<8x16xf32> -> vector<8x16xf32>
    %192 = vector.extract_strided_slice %137 {offsets = [8, 16], sizes = [8, 16], strides = [1, 1]} : vector<16x64xf32> to vector<8x16xf32>
    %193 = vector.extract_strided_slice %148 {offsets = [16, 16], sizes = [16, 16], strides = [1, 1]} : vector<32x96xf32> to vector<16x16xf32>
    %cst_95 = arith.constant dense<0.000000e+00> : vector<8x16xf32>
    %194 = tpu.matmul %192, %193, %cst_95 {dimension_numbers = #tpu.dot_dimension_numbers<[1], [1], [0], [0], [0, 0, 1, 0], [], []>} : vector<8x16xf32>, vector<16x16xf32>, vector<8x16xf32> -> vector<8x16xf32>
    %195 = vector.extract_strided_slice %137 {offsets = [8, 32], sizes = [8, 16], strides = [1, 1]} : vector<16x64xf32> to vector<8x16xf32>
    %196 = vector.extract_strided_slice %148 {offsets = [16, 32], sizes = [16, 16], strides = [1, 1]} : vector<32x96xf32> to vector<16x16xf32>
    %cst_96 = arith.constant dense<0.000000e+00> : vector<8x16xf32>
    %197 = tpu.matmul %195, %196, %cst_96 {dimension_numbers = #tpu.dot_dimension_numbers<[1], [1], [0], [0], [0, 0, 1, 0], [], []>} : vector<8x16xf32>, vector<16x16xf32>, vector<8x16xf32> -> vector<8x16xf32>
    %198 = vector.extract_strided_slice %137 {offsets = [8, 48], sizes = [8, 16], strides = [1, 1]} : vector<16x64xf32> to vector<8x16xf32>
    %199 = vector.extract_strided_slice %148 {offsets = [16, 48], sizes = [16, 16], strides = [1, 1]} : vector<32x96xf32> to vector<16x16xf32>
    %cst_97 = arith.constant dense<0.000000e+00> : vector<8x16xf32>
    %200 = tpu.matmul %198, %199, %cst_97 {dimension_numbers = #tpu.dot_dimension_numbers<[1], [1], [0], [0], [0, 0, 1, 0], [], []>} : vector<8x16xf32>, vector<16x16xf32>, vector<8x16xf32> -> vector<8x16xf32>
    %201 = tpu.concatenate %191, %194, %197, %200 in 0 : vector<8x16xf32>, vector<8x16xf32>, vector<8x16xf32>, vector<8x16xf32> -> vector<32x16xf32>
    %cst_98 = arith.constant 2.500000e-01 : f32
    %202 = vector.broadcast %cst_98 : f32 to vector<32x16xf32>
    %203 = arith.mulf %201, %202 : vector<32x16xf32>
    %cst_99 = arith.constant dense<0xFF800000> : vector<32xf32>
    %204 = vector.multi_reduction <maximumf>, %203, %cst_99 [1] : vector<32x16xf32> to vector<32xf32>
    %205 = vector.shape_cast %204 : vector<32xf32> to vector<32x1xf32>
    %206 = vector.broadcast %205 : vector<32x1xf32> to vector<32x16xf32>
    %207 = arith.subf %203, %206 : vector<32x16xf32>
    %208 = math.exp %207 : vector<32x16xf32>
    %cst_100 = arith.constant dense<0.000000e+00> : vector<32xf32>
    %209 = vector.multi_reduction <add>, %208, %cst_100 [1] : vector<32x16xf32> to vector<32xf32>
    %210 = vector.shape_cast %209 : vector<32xf32> to vector<32x1xf32>
    %211 = tpu.reciprocal %210 {approx = true} : vector<32x1xf32> -> vector<32x1xf32>
    %212 = vector.broadcast %211 : vector<32x1xf32> to vector<32x16xf32>
    %213 = arith.mulf %208, %212 : vector<32x16xf32>
    %214 = vector.extract_strided_slice %213 {offsets = [0, 0], sizes = [8, 16], strides = [1, 1]} : vector<32x16xf32> to vector<8x16xf32>
    %215 = vector.extract_strided_slice %148 {offsets = [16, 64], sizes = [16, 8], strides = [1, 1]} : vector<32x96xf32> to vector<16x8xf32>
    %cst_101 = arith.constant dense<0.000000e+00> : vector<8x8xf32>
    %216 = tpu.matmul %214, %215, %cst_101 {dimension_numbers = #tpu.dot_dimension_numbers<[1], [0], [0], [1], [0, 0, 1, 1], [], []>} : vector<8x16xf32>, vector<16x8xf32>, vector<8x8xf32> -> vector<8x8xf32>
    %217 = vector.extract_strided_slice %213 {offsets = [8, 0], sizes = [8, 16], strides = [1, 1]} : vector<32x16xf32> to vector<8x16xf32>
    %218 = vector.extract_strided_slice %148 {offsets = [16, 72], sizes = [16, 8], strides = [1, 1]} : vector<32x96xf32> to vector<16x8xf32>
    %cst_102 = arith.constant dense<0.000000e+00> : vector<8x8xf32>
    %219 = tpu.matmul %217, %218, %cst_102 {dimension_numbers = #tpu.dot_dimension_numbers<[1], [0], [0], [1], [0, 0, 1, 1], [], []>} : vector<8x16xf32>, vector<16x8xf32>, vector<8x8xf32> -> vector<8x8xf32>
    %220 = vector.extract_strided_slice %213 {offsets = [16, 0], sizes = [8, 16], strides = [1, 1]} : vector<32x16xf32> to vector<8x16xf32>
    %221 = vector.extract_strided_slice %148 {offsets = [16, 80], sizes = [16, 8], strides = [1, 1]} : vector<32x96xf32> to vector<16x8xf32>
    %cst_103 = arith.constant dense<0.000000e+00> : vector<8x8xf32>
    %222 = tpu.matmul %220, %221, %cst_103 {dimension_numbers = #tpu.dot_dimension_numbers<[1], [0], [0], [1], [0, 0, 1, 1], [], []>} : vector<8x16xf32>, vector<16x8xf32>, vector<8x8xf32> -> vector<8x8xf32>
    %223 = vector.extract_strided_slice %213 {offsets = [24, 0], sizes = [8, 16], strides = [1, 1]} : vector<32x16xf32> to vector<8x16xf32>
    %224 = vector.extract_strided_slice %148 {offsets = [16, 88], sizes = [16, 8], strides = [1, 1]} : vector<32x96xf32> to vector<16x8xf32>
    %cst_104 = arith.constant dense<0.000000e+00> : vector<8x8xf32>
    %225 = tpu.matmul %223, %224, %cst_104 {dimension_numbers = #tpu.dot_dimension_numbers<[1], [0], [0], [1], [0, 0, 1, 1], [], []>} : vector<8x16xf32>, vector<16x8xf32>, vector<8x8xf32> -> vector<8x8xf32>
    %226 = tpu.concatenate %216, %219, %222, %225 in 1 : vector<8x8xf32>, vector<8x8xf32>, vector<8x8xf32>, vector<8x8xf32> -> vector<8x32xf32>
    %227 = tpu.concatenate %188, %226 in 0 : vector<8x32xf32>, vector<8x32xf32> -> vector<16x32xf32>
    %cst_105 = arith.constant dense<0.000000e+00> : vector<16x32xf32>
    %228 = tpu.matmul %227, %149, %cst_105 {dimension_numbers = #tpu.dot_dimension_numbers<[1], [0], [0], [1], [0, 0, 1, 1], [], []>} : vector<16x32xf32>, vector<32x32xf32>, vector<16x32xf32> -> vector<16x32xf32>
    %229 = vector.broadcast %150 : vector<1x32xf32> to vector<16x32xf32>
    %230 = arith.addf %228, %229 : vector<16x32xf32>
    %231 = arith.addf %230, %120 : vector<16x32xf32>
    %cst_106 = arith.constant dense<0.000000e+00> : vector<16xf32>
    %232 = vector.multi_reduction <add>, %231, %cst_106 [1] : vector<16x32xf32> to vector<16xf32>
    %233 = vector.shape_cast %232 : vector<16xf32> to vector<16x1xf32>
    %cst_107 = arith.constant 3.200000e+01 : f32
    %234 = vector.broadcast %cst_107 : f32 to vector<16x1xf32>
    %235 = arith.divf %233, %234 : vector<16x1xf32>
    %236 = vector.broadcast %235 : vector<16x1xf32> to vector<16x32xf32>
    %237 = arith.subf %231, %236 : vector<16x32xf32>
    %238 = arith.mulf %237, %237 : vector<16x32xf32>
    %cst_108 = arith.constant dense<0.000000e+00> : vector<16xf32>
    %239 = vector.multi_reduction <add>, %238, %cst_108 [1] : vector<16x32xf32> to vector<16xf32>
    %240 = vector.shape_cast %239 : vector<16xf32> to vector<16x1xf32>
    %cst_109 = arith.constant 3.200000e+01 : f32
    %241 = vector.broadcast %cst_109 : f32 to vector<16x1xf32>
    %242 = arith.divf %240, %241 : vector<16x1xf32>
    %cst_110 = arith.constant 9.99999974E-6 : f32
    %243 = vector.broadcast %cst_110 : f32 to vector<16x1xf32>
    %244 = arith.addf %242, %243 : vector<16x1xf32>
    %245 = math.rsqrt %244 : vector<16x1xf32>
    %246 = vector.broadcast %245 : vector<16x1xf32> to vector<16x32xf32>
    %247 = arith.mulf %237, %246 : vector<16x32xf32>
    %c0_111 = arith.constant 0 : index
    %c0_112 = arith.constant 0 : index
    %248 = vector.load %arg25[%c0_111, %c0_112] : memref<1x32xf32, #tpu.memory_space<vmem>>, vector<1x32xf32>
    %249 = vector.broadcast %248 : vector<1x32xf32> to vector<16x32xf32>
    %250 = arith.mulf %247, %249 : vector<16x32xf32>
    %c0_113 = arith.constant 0 : index
    %c0_114 = arith.constant 0 : index
    %251 = vector.load %arg26[%c0_113, %c0_114] : memref<1x32xf32, #tpu.memory_space<vmem>>, vector<1x32xf32>
    %252 = vector.broadcast %251 : vector<1x32xf32> to vector<16x32xf32>
    %253 = arith.addf %250, %252 : vector<16x32xf32>
    %c0_115 = arith.constant 0 : index
    %c0_116 = arith.constant 0 : index
    %254 = vector.load %arg27[%c0_115, %c0_116] : memref<32x64xf32, #tpu.memory_space<vmem>>, vector<32x64xf32>
    %cst_117 = arith.constant dense<0.000000e+00> : vector<16x64xf32>
    %255 = tpu.matmul %253, %254, %cst_117 {dimension_numbers = #tpu.dot_dimension_numbers<[1], [0], [0], [1], [0, 0, 1, 1], [], []>} : vector<16x32xf32>, vector<32x64xf32>, vector<16x64xf32> -> vector<16x64xf32>
    %c0_118 = arith.constant 0 : index
    %c0_119 = arith.constant 0 : index
    %256 = vector.load %arg28[%c0_118, %c0_119] : memref<1x64xf32, #tpu.memory_space<vmem>>, vector<1x64xf32>
    %257 = vector.broadcast %256 : vector<1x64xf32> to vector<16x64xf32>
    %258 = arith.addf %255, %257 : vector<16x64xf32>
    %cst_120 = arith.constant 0.000000e+00 : f32
    %259 = vector.broadcast %cst_120 : f32 to vector<16x64xf32>
    %260 = arith.maximumf %258, %259 : vector<16x64xf32>
    %c0_121 = arith.constant 0 : index
    %c0_122 = arith.constant 0 : index
    %261 = vector.load %arg29[%c0_121, %c0_122] : memref<64x32xf32, #tpu.memory_space<vmem>>, vector<64x32xf32>
    %cst_123 = arith.constant dense<0.000000e+00> : vector<16x32xf32>
    %262 = tpu.matmul %260, %261, %cst_123 {dimension_numbers = #tpu.dot_dimension_numbers<[1], [0], [0], [1], [0, 0, 1, 1], [], []>} : vector<16x64xf32>, vector<64x32xf32>, vector<16x32xf32> -> vector<16x32xf32>
    %c0_124 = arith.constant 0 : index
    %c0_125 = arith.constant 0 : index
    %263 = vector.load %arg30[%c0_124, %c0_125] : memref<1x32xf32, #tpu.memory_space<vmem>>, vector<1x32xf32>
    %264 = vector.broadcast %263 : vector<1x32xf32> to vector<16x32xf32>
    %265 = arith.addf %262, %264 : vector<16x32xf32>
    %266 = arith.addf %265, %253 : vector<16x32xf32>
    %cst_126 = arith.constant dense<0.000000e+00> : vector<16xf32>
    %267 = vector.multi_reduction <add>, %266, %cst_126 [1] : vector<16x32xf32> to vector<16xf32>
    %268 = vector.shape_cast %267 : vector<16xf32> to vector<16x1xf32>
    %cst_127 = arith.constant 3.200000e+01 : f32
    %269 = vector.broadcast %cst_127 : f32 to vector<16x1xf32>
    %270 = arith.divf %268, %269 : vector<16x1xf32>
    %271 = vector.broadcast %270 : vector<16x1xf32> to vector<16x32xf32>
    %272 = arith.subf %266, %271 : vector<16x32xf32>
    %273 = arith.mulf %272, %272 : vector<16x32xf32>
    %cst_128 = arith.constant dense<0.000000e+00> : vector<16xf32>
    %274 = vector.multi_reduction <add>, %273, %cst_128 [1] : vector<16x32xf32> to vector<16xf32>
    %275 = vector.shape_cast %274 : vector<16xf32> to vector<16x1xf32>
    %cst_129 = arith.constant 3.200000e+01 : f32
    %276 = vector.broadcast %cst_129 : f32 to vector<16x1xf32>
    %277 = arith.divf %275, %276 : vector<16x1xf32>
    %cst_130 = arith.constant 9.99999974E-6 : f32
    %278 = vector.broadcast %cst_130 : f32 to vector<16x1xf32>
    %279 = arith.addf %277, %278 : vector<16x1xf32>
    %280 = math.rsqrt %279 : vector<16x1xf32>
    %281 = vector.broadcast %280 : vector<16x1xf32> to vector<16x32xf32>
    %282 = arith.mulf %272, %281 : vector<16x32xf32>
    %c0_131 = arith.constant 0 : index
    %c0_132 = arith.constant 0 : index
    %283 = vector.load %arg31[%c0_131, %c0_132] : memref<1x32xf32, #tpu.memory_space<vmem>>, vector<1x32xf32>
    %284 = vector.broadcast %283 : vector<1x32xf32> to vector<16x32xf32>
    %285 = arith.mulf %282, %284 : vector<16x32xf32>
    %c0_133 = arith.constant 0 : index
    %c0_134 = arith.constant 0 : index
    %286 = vector.load %arg32[%c0_133, %c0_134] : memref<1x32xf32, #tpu.memory_space<vmem>>, vector<1x32xf32>
    %287 = vector.broadcast %286 : vector<1x32xf32> to vector<16x32xf32>
    %288 = arith.addf %285, %287 : vector<16x32xf32>
    %c0_135 = arith.constant 0 : index
    %c0_136 = arith.constant 0 : index
    %289 = vector.load %arg33[%c0_135, %c0_136] : memref<16x32xf32, #tpu.memory_space<vmem>>, vector<16x32xf32>
    tpu.vector_store %arg33[%c0_135, %c0_136], %288 {strides = array<i32>} : memref<16x32xf32, #tpu.memory_space<vmem>>, vector<16x32xf32>,
    return
  }
}

</mosaic_0001>

<bundles_post_ra>
// kernel: tpu_custom_call.1
= control target key start
LH: loop header
LB: loop body
LE: loop exit
PB: predicated region body
PF: predicated region fallthrough
CT: control target
= control target key end

     0   :  { %s2798_s6 = smov 1   ;;  %s2799_s10 = smov 2   ;;  %s3477_s0 = inlined_call_operand.smem [shape: u32[34], index: -1, kind: input, shape index: {}] }
   0x1   :  { %s2868_s5 = sld [smem:[%s3477_s0]]   ;;  %s2800_s14 = smov 3  }
   0x2   :  { %s2873_s9 = sld [smem:[%s3477_s0 + %s2798_s6]]   ;;  %s2801_s18 = smov 4  }
   0x3   :  { %s2878_s13 = sld [smem:[%s3477_s0 + %s2799_s10]]   ;;  %s2802_s22 = smov 5  }
   0x4   :  { %s2883_s17 = sld [smem:[%s3477_s0 + %s2800_s14]]   ;;  %s2803_s26 = smov 6  }
   0x5   :  { %s2888_s21 = sld [smem:[%s3477_s0 + %s2801_s18]]   ;;  %s2804_s30 = smov 7  }
   0x6   :  { %s2893_s25 = sld [smem:[%s3477_s0 + %s2802_s22]]   ;;  %s2805_s4 = smov 8  }
   0x7   :  { %s2898_s29 = sld [smem:[%s3477_s0 + %s2803_s26]]   ;;  %s2806_s10 = smov 9  }
   0x8   :  { %3481 = sst [smem:[#allocation31_spill]] %s2873_s9  ;;  %s2807_s15 = smov 10  }
   0x9   :  { %3482 = sst [smem:[#allocation32_spill]] %s2878_s13  ;;  %s2808_s20 = smov 11  }
   0xa   :  { %s2903_s3 = sld [smem:[%s3477_s0 + %s2804_s30]]   ;;  %s2809_s26 = smov 12  }
   0xb   :  { %s2908_s8 = sld [smem:[%s3477_s0 + %s2805_s4]]   ;;  %s2810_s1 = smov 13  }
   0xc   :  { %s2913_s14 = sld [smem:[%s3477_s0 + %s2806_s10]]   ;;  %s2811_s7 = smov 14  }
   0xd   :  { %s2918_s19 = sld [smem:[%s3477_s0 + %s2807_s15]]   ;;  %s2812_s15 = smov 15  }
   0xe   :  { %s2923_s24 = sld [smem:[%s3477_s0 + %s2808_s20]]   ;;  %s2813_s22 = smov 16  }
   0xf   :  { %s2928_s30 = sld [smem:[%s3477_s0 + %s2809_s26]]   ;;  %s2814_s28 = smov 17  }
  0x10   :  { %s2933_s6 = sld [smem:[%s3477_s0 + %s2810_s1]]  }
  0x11   :  { %3483 = sst [smem:[#allocation33_spill]] %s2908_s8 }
  0x12   :  { %s2938_s12 = sld [smem:[%s3477_s0 + %s2811_s7]]   ;;  %s2815_s7 = smov 18  }
  0x13   :  { %3484 = sst [smem:[#allocation34_spill]] %s2918_s19 }
  0x14   :  { %3485 = sst [smem:[#allocation35_spill]] %s2923_s24 }
  0x15   :  { %3486 = sst [smem:[#allocation36_spill]] %s2928_s30 }
  0x16   :  { %s2943_s20 = sld [smem:[%s3477_s0 + %s2812_s15]]   ;;  %s2816_s15 = smov 19  }
  0x17   :  { %s2948_s27 = sld [smem:[%s3477_s0 + %s2813_s22]]   ;;  %s2817_s22 = smov 20  }
  0x18   :  { %3487 = sst [smem:[#allocation37_spill]] %s2938_s12 }
  0x19   :  { %s2953_s4 = sld [smem:[%s3477_s0 + %s2814_s28]]   ;;  %s2818_s28 = smov 21  }
  0x1a   :  { %s2958_s13 = sld [smem:[%s3477_s0 + %s2815_s7]]   ;;  %s2819_s7 = smov 22  }
  0x1b   :  { %s2963_s12 = sld [smem:[%s3477_s0 + %s2816_s15]]   ;;  %s2820_s15 = smov 23  }
  0x1c   :  { %s2973_s9 = sld [smem:[%s3477_s0 + %s2818_s28]]   ;;  %s2822_s28 = smov 25  }
  0x1d   :  { %3488 = sst [smem:[#allocation38_spill]] %s2948_s27 }
  0x1e   :  { %s2968_s27 = sld [smem:[%s3477_s0 + %s2817_s22]]   ;;  %s2821_s22 = smov 24  }
  0x1f   :  { %s2983_s30 = sld [smem:[%s3477_s0 + %s2820_s15]]   ;;  %s2824_s15 = smov 27  }
  0x20   :  { %3489 = sst [smem:[#allocation39_spill]] %s2958_s13 }
  0x21   :  { %s2978_s13 = sld [smem:[%s3477_s0 + %s2819_s7]]   ;;  %s2823_s7 = smov 26  }
  0x22   :  { %s2993_s24 = sld [smem:[%s3477_s0 + %s2822_s28]]   ;;  %s2826_s28 = smov 29  }
  0x23   :  { %s3003_s19 = sld [smem:[%s3477_s0 + %s2824_s15]]   ;;  %s2828_s15 = smov 31  }
  0x24   :  { %3490 = sst [smem:[#allocation40_spill]] %s2968_s27 }
  0x25   :  { %s2988_s27 = sld [smem:[%s3477_s0 + %s2821_s22]]   ;;  %s2825_s22 = smov 28  }
  0x26   :  { %s3023_s8 = sld [smem:[%s3477_s0 + %s2828_s15]]  }
  0x27   :  { %3491 = sst [smem:[#allocation41_spill]] %s2978_s13 }
  0x28   :  { %3493 = sst [smem:[#allocation43_spill]] %s2993_s24 }
  0x29   :  { %s2998_s13 = sld [smem:[%s3477_s0 + %s2823_s7]]   ;;  %s2827_s7 = smov 30  }
  0x2a   :  { %s3013_s24 = sld [smem:[%s3477_s0 + %s2826_s28]]   ;;  %s2830_s28 = smov 33  }
  0x2b   :  { %3492 = sst [smem:[#allocation42_spill]] %s2988_s27 }
  0x2c   :  { %s3008_s27 = sld [smem:[%s3477_s0 + %s2825_s22]]   ;;  %s2829_s22 = smov 32  }
  0x2f   :  { %3494 = sst [smem:[#allocation44_spill]] %s2998_s13 }
  0x30   :  { %3496 = sst [smem:[#allocation46_spill]] %s3013_s24 }
  0x31   :  { %s3018_s13 = sld [smem:[%s3477_s0 + %s2827_s7]]  }
  0x32   :  { %3495 = sst [smem:[#allocation45_spill]] %s3008_s27 }
  0x33   :  { %s3028_s27 = sld [smem:[%s3477_s0 + %s2829_s22]]  }
  0x34   :  { %s3033_s24 = sld [smem:[%s3477_s0 + %s2830_s28]]  }
  0x35   :  { %72 = vsyncpa [#allocation3], 0 }
  0x36   :  { %73 = vsyncpa [#allocation6], 0 }
  0x37   :  { %74 = vsyncpa [#allocation9], 0 }
  0x38   :  { %75 = vsyncpa [#allocation12], 0 }
  0x39   :  { %76 = vsyncpa [#allocation15], 0 }
  0x3a   :  { %77 = vsyncpa [#allocation18], 0 }
  0x3b   :  { %78 = vsyncpa [#allocation21], 0 }
  0x3c   :  { %79 = vsyncpa [#allocation4], 0  ;;  %s101_s7 = sshll.u32 %s2883_s17, 4  ;;  %s2831_s10 = smov [#allocation5]   ;;  %s102_s7 = int_to_ptr.hbm [resolvable:$true] %s101_s7 }
  0x3d   :  { %s103_s11 = sshll.u32 %s2831_s10, 4  ;;  %s131_s15 = sshll.u32 %s2903_s3, 4  ;;  %s104_s11 = int_to_ptr.vmem [resolvable:$true] %s103_s11  ;;  %s132_s15 = int_to_ptr.hbm [resolvable:$true] %s131_s15 }
  0x3e   :  { %s2470_s0 = sshra.s32 %s102_s7, 4  ;;  %s2474_s18 = scalar_lea.hbm %s2883_s17, 16  ;;  %s2471_s0 = int_to_ptr.hbm [resolvable:$true] %s2470_s0 }
  0x3f   :  { %s2472_s16 = scalar_lea.hbm %s2471_s0, 16  ;;  %p2475_p1 = scmp.lt.s32.totalorder %s2471_s0, %s2883_s17 }
  0x40   :  { %p2473_p0 = scmp.ne.s32.totalorder %s2471_s0, %s2472_s16  ;;  %p2476_p2 = scmp.lt.s32.totalorder %s2474_s18, %s2472_s16 }
  0x42   :  { %p2477_p3 = por %p2476_p2, %p2475_p1 }
  0x44   :  { %p2478_p4 = pnand %p2477_p3, %p2473_p0 }
  0x46   :  { %2481 = shalt.err (!%p2478_p4)
}
  0x47   :  { %s2832_s22 = smov 128   ;;  %s2833_s23 = smov 8  }
  0x48   :  { %109 = dma.hbm_to_vmem [thread:$0]  %s102_s7, 256, %s104_s11, [#allocation6], %s2832_s22, %s2832_s22, %s2833_s23  }
  0x49   :  { %s2834_s26 = smov [#allocation8]   ;;  %s165_s1 = sshll.u32 %s2933_s6, 4  ;;  %s3043_s1 = int_to_ptr.hbm [resolvable:$true] %s165_s1 }
  0x4a   :  { %s133_s28 = sshll.u32 %s2834_s26, 4  ;;  %s2494_s17 = sshra.s32 %s132_s15, 4  ;;  %s134_s28 = int_to_ptr.vmem [resolvable:$true] %s133_s28  ;;  %s2495_s17 = int_to_ptr.hbm [resolvable:$true] %s2494_s17 }
  0x4b   :  { %s2496_s2 = scalar_lea.hbm %s2495_s17, 32  ;;  %s2498_s10 = scalar_lea.hbm %s2903_s3, 32 }
  0x4c   :  { %p2497_p5 = scmp.ne.s32.totalorder %s2495_s17, %s2496_s2  ;;  %p2499_p6 = scmp.lt.s32.totalorder %s2495_s17, %s2903_s3 }
  0x4d   :  { %p2500_p7 = scmp.lt.s32.totalorder %s2498_s10, %s2496_s2 }
  0x4f   :  { %p2501_p8 = por %p2500_p7, %p2499_p6 }
  0x51   :  { %p2502_p9 = pnand %p2501_p8, %p2497_p5 }
  0x53   :  { %2505 = shalt.err (!%p2502_p9)
}
  0x54   :  { %139 = dma.hbm_to_vmem [thread:$0]  %s132_s15, 512, %s134_s28, [#allocation9], %s2832_s22, %s2832_s22, %s2833_s23  }
  0x55   :  { %s195_s7 = sshll.u32 %s2953_s4, 4  ;;  %s2835_s11 = smov [#allocation11]   ;;  %s3051_s7 = int_to_ptr.hbm [resolvable:$true] %s195_s7 }
  0x56   :  { %s167_s0 = sshll.u32 %s2835_s11, 4  ;;  %s2518_s16 = sshra.s32 %s3043_s1, 4  ;;  %s168_s0 = int_to_ptr.vmem [resolvable:$true] %s167_s0  ;;  %s2519_s16 = int_to_ptr.hbm [resolvable:$true] %s2518_s16 }
  0x57   :  { %s2520_s3 = scalar_lea.hbm %s2519_s16, 32  ;;  %s2522_s18 = scalar_lea.hbm %s2933_s6, 32 }
  0x58   :  { %p2521_p10 = scmp.ne.s32.totalorder %s2519_s16, %s2520_s3  ;;  %p2523_p11 = scmp.lt.s32.totalorder %s2519_s16, %s2933_s6 }
  0x59   :  { %p2524_p12 = scmp.lt.s32.totalorder %s2522_s18, %s2520_s3 }
  0x5b   :  { %p2525_p13 = por %p2524_p12, %p2523_p11 }
  0x5d   :  { %p2526_p0 = pnand %p2525_p13, %p2521_p10 }
  0x5f   :  { %2529 = shalt.err (!%p2526_p0)
}
  0x60   :  { %173 = dma.hbm_to_vmem [thread:$0]  %s3043_s1, 512, %s168_s0, [#allocation12], %s2832_s22, %s2832_s22, %s2833_s23  }
  0x61   :  { %s2836_s15 = smov [#allocation14]   ;;  %s225_s28 = sshll.u32 %s2973_s9, 4  ;;  %s3061_s28 = int_to_ptr.hbm [resolvable:$true] %s225_s28 }
  0x62   :  { %s197_s26 = sshll.u32 %s2836_s15, 4  ;;  %s2542_s6 = sshra.s32 %s3051_s7, 4  ;;  %s198_s26 = int_to_ptr.vmem [resolvable:$true] %s197_s26  ;;  %s2543_s6 = int_to_ptr.hbm [resolvable:$true] %s2542_s6 }
  0x63   :  { %s2544_s17 = scalar_lea.hbm %s2543_s6, 32  ;;  %s2546_s2 = scalar_lea.hbm %s2953_s4, 32 }
  0x64   :  { %p2545_p1 = scmp.ne.s32.totalorder %s2543_s6, %s2544_s17  ;;  %p2547_p2 = scmp.lt.s32.totalorder %s2543_s6, %s2953_s4 }
  0x65   :  { %p2548_p3 = scmp.lt.s32.totalorder %s2546_s2, %s2544_s17 }
  0x67   :  { %p2549_p4 = por %p2548_p3, %p2547_p2 }
  0x69   :  { %p2550_p5 = pnand %p2549_p4, %p2545_p1 }
  0x6b   :  { %2553 = shalt.err (!%p2550_p5)
}
  0x6c   :  { %203 = dma.hbm_to_vmem [thread:$0]  %s3051_s7, 512, %s198_s26, [#allocation15], %s2832_s22, %s2832_s22, %s2833_s23  }
  0x6d   :  { %s84_s1 = sshll.u32 %s2868_s5, 4  ;;  %s2837_s10 = smov [#allocation17]   ;;  %s3071_s1 = int_to_ptr.hbm [resolvable:$true] %s84_s1 }
  0x6e   :  { %s227_s11 = sshll.u32 %s2837_s10, 4  ;;  %s2566_s4 = sshra.s32 %s3061_s28, 4  ;;  %s228_s11 = int_to_ptr.vmem [resolvable:$true] %s227_s11  ;;  %s2567_s4 = int_to_ptr.hbm [resolvable:$true] %s2566_s4 }
  0x6f   :  { %s2568_s0 = scalar_lea.hbm %s2567_s4, 32  ;;  %s2570_s16 = scalar_lea.hbm %s2973_s9, 32 }
  0x70   :  { %p2569_p6 = scmp.ne.s32.totalorder %s2567_s4, %s2568_s0  ;;  %p2571_p7 = scmp.lt.s32.totalorder %s2567_s4, %s2973_s9 }
  0x71   :  { %p2572_p8 = scmp.lt.s32.totalorder %s2570_s16, %s2568_s0 }
  0x73   :  { %p2573_p9 = por %p2572_p8, %p2571_p7 }
  0x75   :  { %p2574_p10 = pnand %p2573_p9, %p2569_p6 }
  0x77   :  { %2577 = shalt.err (!%p2574_p10)
}
  0x78   :  { %233 = dma.hbm_to_vmem [thread:$0]  %s3061_s28, 512, %s228_s11, [#allocation18], %s2832_s22, %s2832_s22, %s2833_s23  }
  0x79   :  { %s2838_s7 = smov [#allocation2]   ;;  %s114_s18 = sshll.u32 %s2888_s21, 4  ;;  %s3081_s18 = int_to_ptr.hbm [resolvable:$true] %s114_s18 }
  0x7a   :  { %s86_s3 = sshll.u32 %s2838_s7, 4  ;;  %s2590_s9 = sshra.s32 %s3071_s1, 4  ;;  %s87_s3 = int_to_ptr.vmem [resolvable:$true] %s86_s3  ;;  %s2591_s9 = int_to_ptr.hbm [resolvable:$true] %s2590_s9 }
  0x7b   :  { %s2592_s15 = scalar_lea.hbm %s2591_s9, 16  ;;  %s2594_s26 = scalar_lea.hbm %s2868_s5, 16 }
  0x7c   :  { %p2593_p11 = scmp.ne.s32.totalorder %s2591_s9, %s2592_s15  ;;  %p2595_p12 = scmp.lt.s32.totalorder %s2591_s9, %s2868_s5 }
  0x7d   :  { %p2596_p13 = scmp.lt.s32.totalorder %s2594_s26, %s2592_s15 }
  0x7f   :  { %p2597_p0 = por %p2596_p13, %p2595_p12 }
  0x81   :  { %p2598_p1 = pnand %p2597_p0, %p2593_p11 }
  0x83   :  { %2601 = shalt.err (!%p2598_p1)
}
  0x84   :  { %92 = dma.hbm_to_vmem [thread:$0]  %s3071_s1, 256, %s87_s3, [#allocation3], %s2832_s22, %s2832_s22, %s2833_s23  }
  0x85   :  { %s146_s28 = sshll.u32 %s2913_s14, 4  ;;  %s2839_s6 = smov [#allocation7]   ;;  %s3091_s28 = int_to_ptr.hbm [resolvable:$true] %s146_s28 }
  0x86   :  { %s116_s17 = sshll.u32 %s2839_s6, 4  ;;  %s2614_s5 = sshra.s32 %s3081_s18, 4  ;;  %s117_s17 = int_to_ptr.vmem [resolvable:$true] %s116_s17  ;;  %s2615_s5 = int_to_ptr.hbm [resolvable:$true] %s2614_s5 }
  0x87   :  { %s2616_s2 = scalar_lea.hbm %s2615_s5, 16  ;;  %s2618_s10 = scalar_lea.hbm %s2888_s21, 16 }
  0x88   :  { %p2617_p2 = scmp.ne.s32.totalorder %s2615_s5, %s2616_s2  ;;  %p2619_p3 = scmp.lt.s32.totalorder %s2615_s5, %s2888_s21 }
  0x89   :  { %p2620_p4 = scmp.lt.s32.totalorder %s2618_s10, %s2616_s2 }
  0x8b   :  { %p2621_p5 = por %p2620_p4, %p2619_p3 }
  0x8d   :  { %p2622_p6 = pnand %p2621_p5, %p2617_p2 }
  0x8f   :  { %2625 = shalt.err (!%p2622_p6)
}
  0x90   :  { %122 = dma.hbm_to_vmem [thread:$0]  %s3081_s18, 256, %s117_s17, [#allocation6], %s2832_s22, %s2832_s22, %s2833_s23  }
  0x91   :  { %s2840_s1 = smov [#allocation10]   ;;  %s180_s4 = sshll.u32 %s2943_s20, 4  ;;  %s3101_s4 = int_to_ptr.hbm [resolvable:$true] %s180_s4 }
  0x92   :  { %s148_s11 = sshll.u32 %s2840_s1, 4  ;;  %s2638_s21 = sshra.s32 %s3091_s28, 4  ;;  %s149_s11 = int_to_ptr.vmem [resolvable:$true] %s148_s11  ;;  %s2639_s21 = int_to_ptr.hbm [resolvable:$true] %s2638_s21 }
  0x93   :  { %s2640_s0 = scalar_lea.hbm %s2639_s21, 32  ;;  %s2642_s16 = scalar_lea.hbm %s2913_s14, 32 }
  0x94   :  { %p2641_p7 = scmp.ne.s32.totalorder %s2639_s21, %s2640_s0  ;;  %p2643_p8 = scmp.lt.s32.totalorder %s2639_s21, %s2913_s14 }
  0x95   :  { %p2644_p9 = scmp.lt.s32.totalorder %s2642_s16, %s2640_s0 }
  0x97   :  { %p2645_p10 = por %p2644_p9, %p2643_p8 }
  0x99   :  { %p2646_p11 = pnand %p2645_p10, %p2641_p7 }
  0x9b   :  { %2649 = shalt.err (!%p2646_p11)
}
  0x9c   :  { %154 = dma.hbm_to_vmem [thread:$0]  %s3091_s28, 512, %s149_s11, [#allocation9], %s2832_s22, %s2832_s22, %s2833_s23  }
  0x9d   :  { %s210_s7 = sshll.u32 %s2963_s12, 4  ;;  %s2841_s3 = smov [#allocation13]   ;;  %s3111_s7 = int_to_ptr.hbm [resolvable:$true] %s210_s7 }
  0x9e   :  { %s182_s18 = sshll.u32 %s2841_s3, 4  ;;  %s2662_s14 = sshra.s32 %s3101_s4, 4  ;;  %s183_s18 = int_to_ptr.vmem [resolvable:$true] %s182_s18  ;;  %s2663_s14 = int_to_ptr.hbm [resolvable:$true] %s2662_s14 }
  0x9f   :  { %s2664_s9 = scalar_lea.hbm %s2663_s14, 32  ;;  %s2666_s15 = scalar_lea.hbm %s2943_s20, 32 }
  0xa0   :  { %p2665_p12 = scmp.ne.s32.totalorder %s2663_s14, %s2664_s9  ;;  %p2667_p13 = scmp.lt.s32.totalorder %s2663_s14, %s2943_s20 }
  0xa1   :  { %p2668_p0 = scmp.lt.s32.totalorder %s2666_s15, %s2664_s9 }
  0xa3   :  { %p2669_p1 = por %p2668_p0, %p2667_p13 }
  0xa5   :  { %p2670_p2 = pnand %p2669_p1, %p2665_p12 }
  0xa7   :  { %2673 = shalt.err (!%p2670_p2)
}
  0xa8   :  { %188 = dma.hbm_to_vmem [thread:$0]  %s3101_s4, 512, %s183_s18, [#allocation12], %s2832_s22, %s2832_s22, %s2833_s23  }
  0xa9   :  { %s2842_s26 = smov [#allocation16]   ;;  %s240_s6 = sshll.u32 %s2983_s30, 4  ;;  %s3121_s6 = int_to_ptr.hbm [resolvable:$true] %s240_s6 }
  0xaa   :  { %s212_s28 = sshll.u32 %s2842_s26, 4  ;;  %s2686_s20 = sshra.s32 %s3111_s7, 4  ;;  %s213_s28 = int_to_ptr.vmem [resolvable:$true] %s212_s28  ;;  %s2687_s20 = int_to_ptr.hbm [resolvable:$true] %s2686_s20 }
  0xab   :  { %s2688_s17 = scalar_lea.hbm %s2687_s20, 32  ;;  %s2690_s5 = scalar_lea.hbm %s2963_s12, 32 }
  0xac   :  { %p2689_p3 = scmp.ne.s32.totalorder %s2687_s20, %s2688_s17  ;;  %p2691_p4 = scmp.lt.s32.totalorder %s2687_s20, %s2963_s12 }
  0xad   :  { %p2692_p5 = scmp.lt.s32.totalorder %s2690_s5, %s2688_s17 }
  0xaf   :  { %p2693_p6 = por %p2692_p5, %p2691_p4 }
  0xb1   :  { %p2694_p7 = pnand %p2693_p6, %p2689_p3 }
  0xb3   :  { %2697 = shalt.err (!%p2694_p7)
}
  0xb4   :  { %218 = dma.hbm_to_vmem [thread:$0]  %s3111_s7, 512, %s213_s28, [#allocation15], %s2832_s22, %s2832_s22, %s2833_s23  }
  0xb5   :  { %s259_s2 = sshll.u32 %s3003_s19, 4  ;;  %s2843_s10 = smov [#allocation19]   ;;  %s3131_s2 = int_to_ptr.hbm [resolvable:$true] %s259_s2 }
  0xb6   :  { %s242_s1 = sshll.u32 %s2843_s10, 4  ;;  %s2710_s12 = sshra.s32 %s3121_s6, 4  ;;  %s243_s1 = int_to_ptr.vmem [resolvable:$true] %s242_s1  ;;  %s2711_s12 = int_to_ptr.hbm [resolvable:$true] %s2710_s12 }
  0xb7   :  { %s2712_s11 = scalar_lea.hbm %s2711_s12, 32  ;;  %s2714_s4 = scalar_lea.hbm %s2983_s30, 32 }
  0xb8   :  { %p2713_p8 = scmp.ne.s32.totalorder %s2711_s12, %s2712_s11  ;;  %p2715_p9 = scmp.lt.s32.totalorder %s2711_s12, %s2983_s30 }
  0xb9   :  { %p2716_p10 = scmp.lt.s32.totalorder %s2714_s4, %s2712_s11 }
  0xbb   :  { %p2717_p11 = por %p2716_p10, %p2715_p9 }
  0xbd   :  { %p2718_p12 = pnand %p2717_p11, %p2713_p8 }
  0xbf   :  { %2721 = shalt.err (!%p2718_p12)
}
  0xc0   :  { %248 = dma.hbm_to_vmem [thread:$0]  %s3121_s6, 512, %s243_s1, [#allocation18], %s2832_s22, %s2832_s22, %s2833_s23  }
  0xc1   :  { %s2844_s21 = smov [#allocation20]   ;;  %s2734_s16 = sshra.s32 %s3131_s2, 4  ;;  %s2735_s16 = int_to_ptr.hbm [resolvable:$true] %s2734_s16 }
  0xc2   :  { %s261_s0 = sshll.u32 %s2844_s21, 4  ;;  %s2736_s7 = scalar_lea.hbm %s2735_s16, 32  ;;  %s262_s0 = int_to_ptr.vmem [resolvable:$true] %s261_s0 }
  0xc3   :  { %p2737_p13 = scmp.ne.s32.totalorder %s2735_s16, %s2736_s7  ;;  %s2738_s30 = scalar_lea.hbm %s3003_s19, 32 }
  0xc4   :  { %p2739_p0 = scmp.lt.s32.totalorder %s2735_s16, %s3003_s19  ;;  %p2740_p1 = scmp.lt.s32.totalorder %s2738_s30, %s2736_s7 }
  0xc6   :  { %p2741_p2 = por %p2740_p1, %p2739_p0 }
  0xc8   :  { %p2742_p3 = pnand %p2741_p2, %p2737_p13 }
  0xca   :  { %2745 = shalt.err (!%p2742_p3)
}
  0xcb   :  { %267 = dma.hbm_to_vmem [thread:$0]  %s3131_s2, 512, %s262_s0, [#allocation21], %s2832_s22, %s2832_s22, %s2833_s23  }
  0xcc   :  { %2782 = dma.done.wait [#allocation3], 256  }
  0xcd   :  { %2783 = vsyncadd [#allocation3], 4294967040 }
  0xce   :  { %2784 = dma.done.wait [#allocation6], 512  }
  0xcf   :  { %2785 = vsyncadd [#allocation6], 4294966784 }
  0xd0   :  { %2786 = dma.done.wait [#allocation9], 1024  }
  0xd1   :  { %2787 = vsyncadd [#allocation9], 4294966272 }
  0xd2   :  { %2788 = dma.done.wait [#allocation12], 1024  }
  0xd3   :  { %2789 = vsyncadd [#allocation12], 4294966272 }
  0xd4   :  { %2790 = dma.done.wait [#allocation15], 1024  }
  0xd5   :  { %2791 = vsyncadd [#allocation15], 4294966272 }
  0xd6   :  { %2792 = dma.done.wait [#allocation18], 1024  }
  0xd7   :  { %2793 = vsyncadd [#allocation18], 4294966272 }
  0xd8   :  { %2794 = dma.done.wait [#allocation21], 512  }
  0xd9   :  { %2795 = vsyncadd [#allocation21], 4294966784  ;;  %v343_v0 = vld [vmem:[%s2893_s25 + $0x18] sm:$0xff]  ;;  %v342_v1 = vld [vmem:[%s2893_s25 + $0x10] sm:$0xff]  ;;  %vm348_vm0 = vcmask 261120   ;;  %s3497_s19 = sld [smem:[#allocation33_spill]] }
  0xda   :  { %367 = vmatpush.msra.mxu1 %v343_v0  ;;  %v341_v2 = vld [vmem:[%s2893_s25 + $0x8] sm:$0xff]  ;;  %v340_v3 = vld [vmem:[%s2893_s25] sm:$0xff]  ;;  %v379_v7 = vld [vmem:[#allocation8 + $0x8] sm:$0xff]  ;;  %s2845_s25 = smov 112   ;;  %s2846_s3 = smov 120   ;;  %vm425_vm1 = vcmask 64512  }
  0xdb   :  { %v3151_v4 = vld [vmem:[#allocation2] sm:$0xff]  ;;  %v381_v5 = vld [vmem:[#allocation8 + $0x18] sm:$0xff]  ;;  %v378_v8 = vld [vmem:[#allocation8] sm:$0xff]  ;;  %s2847_s18 = smov 96   ;;  %s2849_s14 = smov 80   ;;  %vm699_vm2 = vcmask 130048  }
  0xdc   :  { %368 = vmatpush.msra.mxu1 %v342_v1  ;;  %v380_v6 = vld [vmem:[#allocation8 + $0x10] sm:$0xff]  ;;  %v3155_v9 = vld [vmem:[#allocation2 + $0x8] sm:$0xff]  ;;  %v3159_v10 = vld [vmem:[#allocation5] sm:$0xff]  ;;  %s2850_s9 = smov 88   ;;  %s2851_s15 = smov 104   ;;  %vm701_vm3 = vcmask 195584  }
  0xdd   :  { %v3163_v11 = vld [vmem:[#allocation5 + $0x8] sm:$0xff]  ;;  %v2375_v13 = vld [vmem:[%s2898_s29] ss:$0 sm:$0xff]  ;;  %s2848_s29 = smov 72   ;;  %s2852_s26 = smov 56   ;;  %vm2043_vm14 = vcmask 523264  }
  0xde   :  { %369 = vmatpush.msra.mxu1 %v341_v2  ;;  %s2853_s28 = smov 48   ;;  %s2854_s6 = smov 40  }
  0xdf   :  { %v2376_v16 = vld [vmem:[%s3497_s19] ss:$0 sm:$0xff]  ;;  %s2855_s20 = smov 64   ;;  %s2856_s17 = smov 16  }
  0xe0   :  { %370 = vmatpush.msra.mxu1 %v340_v3  ;;  %s2857_s5 = smov 24   ;;  %s3498_s2 = sld [smem:[#allocation34_spill]] }
  0xe1   :  { %2191 = vmatmul.msk.f32.vlgmr.msra.gmra.mxu1 %vm348_vm0, %v3151_v4  ;;  %s3499_s10 = sld [smem:[#allocation35_spill]] }
  0xe2   :  { %404 = vmatpush.msrb.mxu1 %v381_v5  ;;  %s3500_s1 = sld [smem:[#allocation36_spill]] }
  0xe3   :  { %s3501_s12 = sld [smem:[#allocation31_spill]] }
  0xe4   :  { %405 = vmatpush.msrb.mxu1 %v380_v6  ;;  %s3502_s11 = sld [smem:[#allocation38_spill]] }
  0xe5   :  { %s3503_s4 = sld [smem:[#allocation37_spill]] }
  0xe6   :  { %406 = vmatpush.msrb.mxu1 %v379_v7  ;;  %s3504_s21 = sld [smem:[#allocation39_spill]] }
  0xe7   :  { %s3505_s0 = sld [smem:[#allocation32_spill]] }
  0xe8   :  { %407 = vmatpush.msrb.mxu1 %v378_v8  ;;  %s3506_s16 = sld [smem:[#allocation40_spill]] }
  0xe9   :  { %2192 = vmatmul.msk.f32.gmra.mxu1 %vm348_vm0, %v3155_v9  ;;  %s3507_s7 = sld [smem:[#allocation41_spill]] }
  0xea   :  { %s3508_s30 = sld [smem:[#allocation42_spill]] }
  0xeb   :  { %s3509_s19 = sld [smem:[#allocation43_spill]] }
  0xf1   :  { %2193 = vmatmul.msk.f32.vlgmr.msrb.gmra.mxu1 %vm348_vm0, %v3159_v10 }
  0xf9   :  { %2194 = vmatmul.msk.f32.gmra.mxu1 %vm348_vm0, %v3163_v11 }
 0x15e   :  { %v372_v12 = vpop.f32.mrf.mxu1 }
 0x15f   :  { %v373_v18 = vadd.f32 %v2375_v13, %v372_v12 }
 0x166   :  { %v375_v14 = vpop.f32.mrf.mxu1 }
 0x167   :  { %v376_v15 = vadd.f32 %v2375_v13, %v375_v14 }
 0x16e   :  { %v409_v17 = vpop.f32.mrf.mxu1 }
 0x16f   :  { %v410_v19 = vadd.f32 %v2376_v16, %v409_v17 }
 0x171   :  { %v415_v20 = vadd.f32 %v410_v19, %v373_v18 }
 0x173   :  { %478 = vrot.lane.b32.xlu2 %v415_v20, %s2845_s25  ;;  %450 = vrot.lane.b32.xlu1 %v415_v20, %s2846_s3 }
 0x174   :  { %423 = vrot.lane.b32.xlu0 %v415_v20, %s2847_s18 }
 0x176   :  { %v412_v21 = vpop.f32.mrf.mxu1 }
 0x177   :  { %v413_v22 = vadd.f32 %v2376_v16, %v412_v21 }
 0x179   :  { %v3172_v23 = vadd.f32 %v413_v22, %v376_v15 }
 0x17b   :  { %508 = vrot.lane.b32.xlu2 %v415_v20, %s2848_s29  ;;  %480 = vrot.lane.b32.xlu1 %v415_v20, %s2849_s14 }
 0x17c   :  { %452 = vrot.lane.b32.xlu0 %v415_v20, %s2850_s9 }
 0x184   :  { %506 = vrot.lane.b32.xlu0 %v415_v20, %s2851_s15 }
 0x1cd   :  { %v479_v24 = vpop.permute.xlu2 %478 }
 0x1d5   :  { %v509_v29 = vpop.permute.xlu2 %508 }
 0x1e5   :  { %v451_v25 = vpop.permute.xlu1 %450 }
 0x1e6   :  { %v424_v26 = vpop.permute.xlu0 %423 }
 0x1e7   :  { %2195 = vmatpush.xpose.msk.msra.mxu2 %vm425_vm1, %v424_v26 }
 0x1ea   :  { %2196 = vmatmul.msk.f32.vlgmr.msra.gmra.mxu2 %vm425_vm1, %v415_v20 }
 0x1ed   :  { %v481_v27 = vpop.permute.xlu1 %480 }
 0x1ee   :  { %v453_v28 = vpop.permute.xlu0 %452  ;;  %2199 = vmatpush.xpose.msk.msrb.mxu2 %vm425_vm1, %v481_v27 }
 0x1ef   :  { %2197 = vmatpush.xpose.msk.msra.mxu3 %vm425_vm1, %v453_v28 }
 0x1f2   :  { %2198 = vmatmul.msk.f32.vlgmr.msra.gmra.mxu3 %vm425_vm1, %v451_v25  ;;  %2200 = vmatmul.msk.f32.vlgmr.msrb.gmra.mxu2 %vm425_vm1, %v479_v24 }
 0x1f3   :  { %2201 = vmatpush.xpose.msk.msrb.mxu3 %vm425_vm1, %v509_v29 }
 0x1f6   :  { %v507_v30 = vpop.permute.xlu0 %506 }
 0x1fa   :  { %2202 = vmatmul.msk.f32.vlgmr.msrb.gmra.mxu3 %vm425_vm1, %v507_v30 }
 0x26d   :  { %v447_v31 = vpop.f32.mrf.mxu2 }
 0x26e   :  { %v534_v38 = vmul.f32 0.35355338, %v447_v31 }
 0x270   :  { %v538_v41 = vsel %vm425_vm1, %v534_v38, -inf }
 0x275   :  { %v475_v32 = vpop.f32.mrf.mxu3  ;;  %v503_v33 = vpop.f32.mrf.mxu2 }
 0x276   :  { %v535_v34 = vmul.f32 0.35355338, %v475_v32  ;;  %v536_v35 = vmul.f32 0.35355338, %v503_v33 }
 0x278   :  { %v544_v36 = vsel %vm425_vm1, %v536_v35, -inf  ;;  %v541_v37 = vsel %vm425_vm1, %v535_v34, -inf }
 0x279   :  { %545 = vmax.xlane.f32.xlu2 %v544_v36  ;;  %542 = vmax.xlane.f32.xlu1 %v541_v37 }
 0x27d   :  { %v531_v39 = vpop.f32.mrf.mxu3 }
 0x27e   :  { %v537_v40 = vmul.f32 0.35355338, %v531_v39 }
 0x280   :  { %v547_v42 = vsel %vm425_vm1, %v537_v40, -inf }
 0x281   :  { %539 = vmax.xlane.f32.xlu2 %v538_v41  ;;  %548 = vmax.xlane.f32.xlu0 %v547_v42 }
 0x292   :  { %732 = vrot.lane.b32.xlu1 %v3172_v23, %s2850_s9  ;;  %s2774_s9 = scalar_lea.hbm %s3033_s24, 16 }
 0x295   :  { %608 = vrot.lane.b32.xlu0 %v415_v20, %s2852_s26 }
 0x299   :  { %634 = vrot.lane.b32.xlu2 %v415_v20, %s2853_s28 }
 0x29d   :  { %730 = vrot.lane.b32.xlu0 %v3172_v23, %s2846_s3  ;;  %s3511_s3 = sld [smem:[#allocation46_spill]] }
 0x2a1   :  { %760 = vrot.lane.b32.xlu2 %v3172_v23, %s2849_s14 }
 0x2a5   :  { %660 = vrot.lane.b32.xlu0 %v415_v20, %s2854_s6 }
 0x2ad   :  { %758 = vrot.lane.b32.xlu0 %v3172_v23, %s2845_s25 }
 0x2b5   :  { %582 = vrot.lane.b32.xlu0 %v415_v20, %s2855_s20 }
 0x2ec   :  { %v546_v43 = vpop.xlane.xlu2 %545  ;;  %v543_v44 = vpop.xlane.xlu1 %542 }
 0x2ed   :  { %v552_v45 = vsub.f32 %v536_v35, %v546_v43  ;;  %v551_v46 = vsub.f32 %v535_v34, %v543_v44 }
 0x2ef   :  { %v558_v47 = vmul.f32 1.442695, %v552_v45  ;;  %v556_v48 = vmul.f32 1.442695, %v551_v46 }
 0x2f1   :  { %2392 = vpow2.f32 %v558_v47 }
 0x2f2   :  { %2394 = vpow2.f32 %v556_v48 }
 0x2f4   :  { %v540_v49 = vpop.xlane.xlu2 %539  ;;  %v549_v50 = vpop.xlane.xlu0 %548 }
 0x2f5   :  { %v553_v51 = vsub.f32 %v537_v40, %v549_v50  ;;  %v550_v2 = vsub.f32 %v534_v38, %v540_v49 }
 0x2f7   :  { %v2393_v52 = vpop.eup %2392  ;;  %v560_v53 = vmul.f32 1.442695, %v553_v51  ;;  %v554_v3 = vmul.f32 1.442695, %v550_v2 }
 0x2f8   :  { %v2395_v54 = vpop.eup %2394  ;;  %v568_v55 = vsel %vm425_vm1, %v2393_v52, 0.0 }
 0x2f9   :  { %569 = vadd.xlane.f32.xlu2 %v568_v55  ;;  %v565_v56 = vsel %vm425_vm1, %v2395_v54, 0.0  ;;  %2396 = vpow2.f32 %v560_v53 }
 0x2fa   :  { %566 = vadd.xlane.f32.xlu1 %v565_v56  ;;  %2398 = vpow2.f32 %v554_v3 }
 0x2fc   :  { %v635_v57 = vpop.permute.xlu2 %634 }
 0x2fd   :  { %655 = vmatpush.msra.mxu0 %v635_v57 }
 0x2ff   :  { %v2397_v58 = vpop.eup %2396 }
 0x300   :  { %v571_v59 = vsel %vm425_vm1, %v2397_v58, 0.0  ;;  %v2399_v5 = vpop.eup %2398 }
 0x301   :  { %v562_v6 = vsel %vm425_vm1, %v2399_v5, 0.0 }
 0x302   :  { %572 = vadd.xlane.f32.xlu1 %v571_v59 }
 0x304   :  { %v733_v61 = vpop.permute.xlu1 %732  ;;  %v761_v7 = vpop.permute.xlu2 %760 }
 0x307   :  { %v609_v60 = vpop.permute.xlu0 %608 }
 0x308   :  { %629 = vmatpush.msra.mxu3 %v609_v60 }
 0x30a   :  { %2209 = vmatpush.xpose.msk.msrb.mxu3 %vm425_vm1, %v733_v61 }
 0x30f   :  { %v731_v62 = vpop.permute.xlu0 %730 }
 0x311   :  { %786 = vrot.lane.b32.xlu2 %v3172_v23, %s2851_s15 }
 0x317   :  { %v661_v63 = vpop.permute.xlu0 %660 }
 0x318   :  { %681 = vmatpush.msrb.mxu0 %v661_v63 }
 0x319   :  { %704 = vrot.lane.b32.xlu2 %v3172_v23, %s2847_s18 }
 0x31b   :  { %788 = vrot.lane.b32.xlu1 %v3172_v23, %s2848_s29 }
 0x31f   :  { %v759_v0 = vpop.permute.xlu0 %758 }
 0x327   :  { %v583_v1 = vpop.permute.xlu0 %582 }
 0x328   :  { %603 = vmatpush.msra.mxu2 %v583_v1 }
 0x345   :  { %563 = vadd.xlane.f32.xlu1 %v562_v6 }
 0x36c   :  { %v570_v8 = vpop.xlane.xlu2 %569 }
 0x36d   :  { %2400 = vrcp.f32 %v570_v8  ;;  %v567_v12 = vpop.xlane.xlu1 %566 }
 0x36e   :  { %2402 = vrcp.f32 %v567_v12 }
 0x373   :  { %v2401_v13 = vpop.eup %2400 }
 0x374   :  { %v2403_v14 = vpop.eup %2402  ;;  %v787_v15 = vpop.permute.xlu2 %786  ;;  %v580_v16 = vmul.f32 %v2401_v13, %v2393_v52 }
 0x375   :  { %v579_v17 = vmul.f32 %v2403_v14, %v2395_v54  ;;  %v573_v18 = vpop.xlane.xlu1 %572 }
 0x376   :  { %2404 = vrcp.f32 %v573_v18  ;;  %2205 = vmatmul.msk.f32.vlgmr.msra.gmra.mxu0 %vm425_vm1, %v580_v16  ;;  %v419_v16 = vld [vmem:[#allocation10 + $0x10] sm:$0xff]  ;;  %v417_v18 = vld [vmem:[#allocation10] sm:$0xff] }
 0x377   :  { %2204 = vmatmul.msk.f32.vlgmr.msra.gmra.mxu3 %vm425_vm1, %v579_v17  ;;  %2211 = vmatpush.xpose.msk.msra.mxu0 %vm425_vm1, %v761_v7  ;;  %v418_v17 = vld [vmem:[#allocation10 + $0x8] sm:$0xff] }
 0x37c   :  { %v2405_v19 = vpop.eup %2404  ;;  %v705_v20 = vpop.permute.xlu2 %704 }
 0x37d   :  { %2207 = vmatpush.xpose.msk.msrb.mxu2 %vm425_vm1, %v705_v20  ;;  %v581_v21 = vmul.f32 %v2405_v19, %v2397_v58 }
 0x37f   :  { %2206 = vmatmul.msk.f32.vlgmr.msrb.gmra.mxu0 %vm425_vm1, %v581_v21  ;;  %2210 = vmatmul.msk.f32.vlgmr.msrb.gmra.mxu3 %vm425_vm1, %v731_v62 }
 0x387   :  { %2212 = vmatmul.msk.f32.vlgmr.msra.gmra.mxu0 %vm425_vm1, %v759_v0 }
 0x38d   :  { %v789_v22 = vpop.permute.xlu1 %788 }
 0x38e   :  { %2213 = vmatpush.xpose.msk.msra.mxu1 %vm425_vm1, %v789_v22 }
 0x391   :  { %2214 = vmatmul.msk.f32.vlgmr.msra.gmra.mxu1 %vm425_vm1, %v787_v15  ;;  %v420_v15 = vld [vmem:[#allocation10 + $0x18] sm:$0xff] }
 0x3b8   :  { %v564_v24 = vpop.xlane.xlu1 %563 }
 0x3b9   :  { %2406 = vrcp.f32 %v564_v24 }
 0x3bf   :  { %v2407_v25 = vpop.eup %2406 }
 0x3c0   :  { %v578_v26 = vmul.f32 %v2407_v25, %v2399_v5 }
 0x3c2   :  { %2203 = vmatmul.msk.f32.vlgmr.msra.gmra.mxu2 %vm425_vm1, %v578_v26 }
 0x3ca   :  { %2208 = vmatmul.msk.f32.vlgmr.msrb.gmra.mxu2 %vm425_vm1, %v3172_v23 }
 0x3f3   :  { %v657_v27 = vpop.f32.mrf.mxu0 }
 0x3fa   :  { %v631_v28 = vpop.f32.mrf.mxu3 }
 0x3fc   :  { %v683_v29 = vpop.f32.mrf.mxu0 }
 0x402   :  { %v755_v30 = vpop.f32.mrf.mxu3 }
 0x403   :  { %v815_v31 = vmul.f32 0.35355338, %v755_v30 }
 0x404   :  { %v783_v32 = vpop.f32.mrf.mxu0 }
 0x405   :  { %v816_v33 = vmul.f32 0.35355338, %v783_v32  ;;  %v821_v34 = vsel %vm425_vm1, %v815_v31, -inf }
 0x406   :  { %822 = vmax.xlane.f32.xlu0 %v821_v34 }
 0x407   :  { %v824_v35 = vsel %vm425_vm1, %v816_v33, -inf }
 0x408   :  { %825 = vmax.xlane.f32.xlu2 %v824_v35 }
 0x40e   :  { %v811_v36 = vpop.f32.mrf.mxu1 }
 0x40f   :  { %v817_v37 = vmul.f32 0.35355338, %v811_v36 }
 0x411   :  { %v827_v38 = vsel %vm425_vm1, %v817_v37, -inf }
 0x412   :  { %828 = vmax.xlane.f32.xlu1 %v827_v38 }
 0x420   :  { %914 = vrot.lane.b32.xlu2 %v3172_v23, %s2853_s28 }
 0x445   :  { %v3232_v52 = vpop.f32.mrf.mxu2 }
 0x44d   :  { %v727_v56 = vpop.f32.mrf.mxu2 }
 0x44e   :  { %v814_v57 = vmul.f32 0.35355338, %v727_v56 }
 0x450   :  { %v818_v58 = vsel %vm425_vm1, %v814_v57, -inf }
 0x479   :  { %v823_v39 = vpop.xlane.xlu0 %822 }
 0x47a   :  { %v831_v40 = vsub.f32 %v815_v31, %v823_v39  ;;  %v2377_v39 = vld [vmem:[%s3498_s2] ss:$0 sm:$0xff] }
 0x47b   :  { %v826_v41 = vpop.xlane.xlu2 %825 }
 0x47c   :  { %v836_v42 = vmul.f32 1.442695, %v831_v40  ;;  %v832_v43 = vsub.f32 %v816_v33, %v826_v41 }
 0x47e   :  { %2408 = vpow2.f32 %v836_v42  ;;  %v838_v44 = vmul.f32 1.442695, %v832_v43 }
 0x480   :  { %2410 = vpow2.f32 %v838_v44  ;;  %v2858_v44 = vmov 32.0  }
 0x483   :  { %v915_v45 = vpop.permute.xlu2 %914 }
 0x484   :  { %v2409_v46 = vpop.eup %2408  ;;  %935 = vmatpush.msrb.mxu0 %v915_v45 }
 0x485   :  { %v829_v47 = vpop.xlane.xlu1 %828  ;;  %v845_v48 = vsel %vm425_vm1, %v2409_v46, 0.0 }
 0x486   :  { %v2411_v49 = vpop.eup %2410  ;;  %v833_v50 = vsub.f32 %v817_v37, %v829_v47  ;;  %846 = vadd.xlane.f32.xlu0 %v845_v48 }
 0x487   :  { %v848_v51 = vsel %vm425_vm1, %v2411_v49, 0.0 }
 0x488   :  { %v840_v53 = vmul.f32 1.442695, %v833_v50  ;;  %849 = vadd.xlane.f32.xlu2 %v848_v51 }
 0x48a   :  { %2412 = vpow2.f32 %v840_v53 }
 0x490   :  { %v2413_v54 = vpop.eup %2412 }
 0x491   :  { %v851_v55 = vsel %vm425_vm1, %v2413_v54, 0.0 }
 0x492   :  { %852 = vadd.xlane.f32.xlu1 %v851_v55 }
 0x49a   :  { %819 = vmax.xlane.f32.xlu1 %v818_v58  ;;  %888 = vrot.lane.b32.xlu0 %v3172_v23, %s2852_s26 }
 0x4a0   :  { %862 = vrot.lane.b32.xlu2 %v3172_v23, %s2855_s20 }
 0x4a8   :  { %691 = vrot.lane.b32.xlu2 %v657_v27, %s2856_s17 }
 0x4b3   :  { %940 = vrot.lane.b32.xlu1 %v3172_v23, %s2854_s6 }
 0x4bb   :  { %687 = vrot.lane.b32.xlu1 %v631_v28, %s2833_s23 }
 0x4c3   :  { %695 = vrot.lane.b32.xlu1 %v683_v29, %s2857_s5 }
 0x4f9   :  { %v847_v60 = vpop.xlane.xlu0 %846 }
 0x4fb   :  { %v850_v59 = vpop.xlane.xlu2 %849 }
 0x4fc   :  { %2414 = vrcp.f32 %v850_v59  ;;  %v1081_v59 = vld [vmem:[#allocation11 + $0x18] sm:$0xff] }
 0x4fd   :  { %2416 = vrcp.f32 %v847_v60  ;;  %v1080_v60 = vld [vmem:[#allocation11 + $0x10] sm:$0xff] }
 0x502   :  { %v2415_v61 = vpop.eup %2414 }
 0x503   :  { %v860_v62 = vmul.f32 %v2415_v61, %v2411_v49  ;;  %v863_v63 = vpop.permute.xlu2 %862  ;;  %v2417_v1 = vpop.eup %2416  ;;  %v1079_v61 = vld [vmem:[#allocation11 + $0x8] sm:$0xff] }
 0x504   :  { %883 = vmatpush.msra.mxu2 %v863_v63  ;;  %v859_v2 = vmul.f32 %v2417_v1, %v2409_v46  ;;  %v1118_v63 = vld [vmem:[#allocation13 + $0x18] sm:$0xff] }
 0x505   :  { %v853_v0 = vpop.xlane.xlu1 %852  ;;  %2217 = vmatmul.msk.f32.vlgmr.msrb.gmra.mxu0 %vm425_vm1, %v860_v62  ;;  %v1078_v62 = vld [vmem:[#allocation11] sm:$0xff]  ;;  %v1151_v1 = vld [vmem:[#allocation14 + $0x18] sm:$0xff] }
 0x506   :  { %1002 = vmatpush.msrb.mxu2 %v420_v15  ;;  %1135 = vmatpush.msra.mxu0 %v1118_v63 }
 0x508   :  { %1003 = vmatpush.msrb.mxu2 %v419_v16 }
 0x50a   :  { %1004 = vmatpush.msrb.mxu2 %v418_v17 }
 0x50b   :  { %v692_v28 = vpop.permute.xlu2 %691 }
 0x50c   :  { %v889_v3 = vpop.permute.xlu0 %888  ;;  %1005 = vmatpush.msrb.mxu2 %v417_v18 }
 0x50d   :  { %v820_v23 = vpop.xlane.xlu1 %819  ;;  %909 = vmatpush.msra.mxu3 %v889_v3  ;;  %v1150_v3 = vld [vmem:[#allocation14 + $0x10] sm:$0xff] }
 0x50e   :  { %v830_v5 = vsub.f32 %v814_v57, %v820_v23  ;;  %2216 = vmatmul.msk.f32.vlgmr.msra.gmra.mxu3 %vm425_vm1, %v859_v2  ;;  %v1116_v2 = vld [vmem:[#allocation13 + $0x8] sm:$0xff] }
 0x50f   :  { %1104 = vmatpush.msrb.mxu3 %v1081_v59  ;;  %v1149_v23 = vld [vmem:[#allocation14 + $0x8] sm:$0xff] }
 0x510   :  { %v834_v6 = vmul.f32 1.442695, %v830_v5 }
 0x511   :  { %1105 = vmatpush.msrb.mxu3 %v1080_v60 }
 0x512   :  { %2418 = vpow2.f32 %v834_v6 }
 0x513   :  { %2420 = vrcp.f32 %v853_v0  ;;  %1106 = vmatpush.msrb.mxu3 %v1079_v61  ;;  %v1117_v0 = vld [vmem:[#allocation13 + $0x10] sm:$0xff] }
 0x514   :  { %1136 = vmatpush.msra.mxu0 %v1117_v0  ;;  %v332_v0 = vld [vmem:[%s3505_s0] sm:$0xff] }
 0x515   :  { %1107 = vmatpush.msrb.mxu3 %v1078_v62 }
 0x516   :  { %1137 = vmatpush.msra.mxu0 %v1116_v2 }
 0x518   :  { %v2419_v7 = vpop.eup %2418 }
 0x519   :  { %v842_v8 = vsel %vm425_vm1, %v2419_v7, 0.0  ;;  %v2421_v12 = vpop.eup %2420 }
 0x51a   :  { %843 = vadd.xlane.f32.xlu0 %v842_v8  ;;  %v861_v13 = vmul.f32 %v2421_v12, %v2413_v54  ;;  %v338_v8 = vld [vmem:[#allocation7] sm:$0xff] }
 0x525   :  { %v941_v14 = vpop.permute.xlu1 %940 }
 0x526   :  { %961 = vmatpush.msrb.mxu1 %v941_v14 }
 0x527   :  { %2218 = vmatmul.msk.f32.vlgmr.msrb.gmra.mxu1 %vm425_vm1, %v861_v13 }
 0x528   :  { %1174 = vmatpush.msra.mxu1 %v1151_v1 }
 0x52a   :  { %1175 = vmatpush.msra.mxu1 %v1150_v3  ;;  %v333_v3 = vld [vmem:[%s3505_s0 + $0x8] sm:$0xff] }
 0x52c   :  { %1176 = vmatpush.msra.mxu1 %v1149_v23  ;;  %v335_v23 = vld [vmem:[%s3505_s0 + $0x18] sm:$0xff] }
 0x52d   :  { %v688_v21 = vpop.permute.xlu1 %687 }
 0x52e   :  { %v698_v26 = vsel %vm425_vm1, %v3232_v52, %v688_v21 }
 0x52f   :  { %v700_v29 = vsel %vm699_vm2, %v698_v26, %v692_v28 }
 0x535   :  { %v696_v27 = vpop.permute.xlu1 %695 }
 0x536   :  { %v702_v30 = vsel %vm701_vm3, %v700_v29, %v696_v27  ;;  %v2379_v27 = vld [vmem:[%s3500_s1] ss:$0 sm:$0xff] }
 0x582   :  { %v937_v19 = vpop.f32.mrf.mxu0 }
 0x583   :  { %971 = vrot.lane.b32.xlu1 %v937_v19, %s2856_s17 }
 0x58d   :  { %v844_v20 = vpop.xlane.xlu0 %843 }
 0x58e   :  { %2422 = vrcp.f32 %v844_v20 }
 0x58f   :  { %2424 = vrcp.f32 %v2858_v44 }
 0x591   :  { %v911_v22 = vpop.f32.mrf.mxu3 }
 0x592   :  { %967 = vrot.lane.b32.xlu2 %v911_v22, %s2833_s23 }
 0x594   :  { %v2423_v24 = vpop.eup %2422 }
 0x595   :  { %v858_v25 = vmul.f32 %v2423_v24, %v2419_v7  ;;  %v2425_v45 = vpop.eup %2424  ;;  %v1148_v7 = vld [vmem:[#allocation14] sm:$0xff]  ;;  %v2378_v24 = vld [vmem:[%s3499_s10] ss:$0 sm:$0xff] }
 0x596   :  { %v1022_v46 = vmul.f32 32.0, %v2425_v45  ;;  %vm1026_vm4 = vweird.f32 %v2425_v45  ;;  %1177 = vmatpush.msra.mxu1 %v1148_v7  ;;  %v2383_v7 = vld [vmem:[%s3506_s16] ss:$0 sm:$0xff] }
 0x597   :  { %2215 = vmatmul.msk.f32.vlgmr.msra.gmra.mxu2 %vm425_vm1, %v858_v25  ;;  %2225 = vmatmul.msk.f32.vlgmr.msra.gmra.mxu1 %vm348_vm0, %v338_v8  ;;  %v2384_v8 = vld [vmem:[%s3507_s7] ss:$0 sm:$0xff] }
 0x598   :  { %v1023_v47 = vsub.f32 1.0, %v1022_v46 }
 0x59a   :  { %v1024_v48 = vmul.f32 %v2425_v45, %v1023_v47 }
 0x59c   :  { %v1025_v49 = vadd.f32 %v2425_v45, %v1024_v48  ;;  %v330_v48 = vld [vmem:[%s3501_s12 + $0x10] sm:$0xff] }
 0x59e   :  { %v3265_v50 = vsel %vm1026_vm4, %v2425_v45, %v1025_v49 }
 0x59f   :  { %2219 = vmatmul.msk.f32.vlgmr.msrb.gmra.mxu2 %vm348_vm0, %v702_v30  ;;  %v1239_v30 = vld [vmem:[#allocation17 + $0x18] sm:$0xff] }
 0x5a0   :  { %1268 = vmatpush.msra.mxu3 %v1239_v30 }
 0x5a4   :  { %v963_v31 = vpop.f32.mrf.mxu1 }
 0x5a5   :  { %975 = vrot.lane.b32.xlu2 %v963_v31, %s2857_s5  ;;  %v1189_v31 = vld [vmem:[#allocation16 + $0x10] sm:$0xff] }
 0x5ec   :  { %v968_v32 = vpop.permute.xlu2 %967 }
 0x5f5   :  { %v972_v34 = vpop.permute.xlu1 %971 }
 0x5ff   :  { %v976_v36 = vpop.permute.xlu2 %975 }
 0x614   :  { %v1179_v59 = vpop.f32.mrf.mxu1 }
 0x61a   :  { %v885_v33 = vpop.f32.mrf.mxu2 }
 0x61b   :  { %v978_v35 = vsel %vm425_vm1, %v885_v33, %v968_v32  ;;  %v1238_v32 = vld [vmem:[#allocation17 + $0x10] sm:$0xff] }
 0x61c   :  { %v979_v37 = vsel %vm699_vm2, %v978_v35, %v972_v34  ;;  %1269 = vmatpush.msra.mxu3 %v1238_v32  ;;  %v1188_v35 = vld [vmem:[#allocation16 + $0x8] sm:$0xff] }
 0x61d   :  { %v980_v38 = vsel %vm701_vm3, %v979_v37, %v976_v36  ;;  %v1237_v36 = vld [vmem:[#allocation17 + $0x8] sm:$0xff] }
 0x61e   :  { %2220 = vmatmul.msk.f32.gmra.mxu2 %vm348_vm0, %v980_v38  ;;  %1270 = vmatpush.msra.mxu3 %v1237_v36  ;;  %v1187_v38 = vld [vmem:[#allocation16] sm:$0xff] }
 0x622   :  { %v1007_v40 = vpop.f32.mrf.mxu2 }
 0x623   :  { %v1008_v41 = vadd.f32 %v2377_v39, %v1007_v40  ;;  %v339_v40 = vld [vmem:[#allocation7 + $0x8] sm:$0xff] }
 0x624   :  { %2226 = vmatmul.msk.f32.gmra.mxu1 %vm348_vm0, %v339_v40 }
 0x625   :  { %v1013_v42 = vadd.f32 %v1008_v41, %v3151_v4  ;;  %v328_v41 = vld [vmem:[%s3501_s12] sm:$0xff] }
 0x627   :  { %v1015_v43 = vsel %vm348_vm0, %v1013_v42, 0.0 }
 0x628   :  { %1016 = vadd.xlane.f32.xlu1 %v1015_v43 }
 0x69b   :  { %v1017_v51 = vpop.xlane.xlu1 %1016 }
 0x69c   :  { %v1028_v52 = vmul.f32 %v3265_v50, %v1017_v51 }
 0x69e   :  { %v1030_v53 = vsub.f32 %v1013_v42, %v1028_v52  ;;  %v329_v42 = vld [vmem:[%s3501_s12 + $0x8] sm:$0xff] }
 0x6a0   :  { %v1032_v54 = vmul.f32 %v1030_v53, %v1030_v53 }
 0x6a1   :  { %v1010_v55 = vpop.f32.mrf.mxu2 }
 0x6a2   :  { %v1011_v4 = vadd.f32 %v2377_v39, %v1010_v55  ;;  %v1034_v56 = vsel %vm348_vm0, %v1032_v54, 0.0  ;;  %v1236_v39 = vld [vmem:[#allocation17] sm:$0xff]  ;;  %v331_v54 = vld [vmem:[%s3501_s12 + $0x18] sm:$0xff] }
 0x6a3   :  { %1035 = vadd.xlane.f32.xlu0 %v1034_v56  ;;  %1271 = vmatpush.msra.mxu3 %v1236_v39 }
 0x6a4   :  { %v1014_v57 = vadd.f32 %v1011_v4, %v3155_v9  ;;  %v1115_v9 = vld [vmem:[#allocation13] sm:$0xff]  ;;  %v2381_v4 = vld [vmem:[%s3502_s11] ss:$0 sm:$0xff] }
 0x6a5   :  { %1138 = vmatpush.msra.mxu0 %v1115_v9  ;;  %v334_v9 = vld [vmem:[%s3505_s0 + $0x10] sm:$0xff] }
 0x6a6   :  { %v1018_v58 = vsel %vm348_vm0, %v1014_v57, 0.0  ;;  %2223 = vmatmul.msk.f32.vlgmr.msra.gmra.mxu0 %vm348_vm0, %v3159_v10 }
 0x6a7   :  { %1019 = vadd.xlane.f32.xlu2 %v1018_v58  ;;  %v2382_v58 = vld [vmem:[%s3504_s21] ss:$0 sm:$0xff] }
 0x6a8   :  { %v1180_v63 = vadd.f32 %v2382_v58, %v1179_v59 }
 0x6ae   :  { %2224 = vmatmul.msk.f32.gmra.mxu0 %vm348_vm0, %v3163_v11  ;;  %v1190_v11 = vld [vmem:[#allocation16 + $0x18] sm:$0xff] }
 0x6af   :  { %1219 = vmatpush.msra.mxu2 %v1190_v11 }
 0x6b1   :  { %1220 = vmatpush.msra.mxu2 %v1189_v31 }
 0x6b3   :  { %1221 = vmatpush.msra.mxu2 %v1188_v35 }
 0x6b5   :  { %1222 = vmatpush.msra.mxu2 %v1187_v38 }
 0x6b6   :  { %2227 = vmatmul.msk.f32.vlgmr.msra.gmra.mxu2 %vm348_vm0, %v328_v41 }
 0x6be   :  { %2228 = vmatmul.msk.f32.gmra.mxu2 %vm348_vm0, %v329_v42 }
 0x6c6   :  { %2229 = vmatmul.msk.f32.gmra.mxu2 %vm348_vm0, %v330_v48 }
 0x6ce   :  { %2230 = vmatmul.msk.f32.gmra.mxu2 %vm348_vm0, %v331_v54 }
 0x716   :  { %v1036_v5 = vpop.xlane.xlu0 %1035 }
 0x717   :  { %v1040_v6 = vmul.f32 %v1036_v5, %v3265_v50 }
 0x719   :  { %v1042_v12 = vadd.f32 1e-05, %v1040_v6 }
 0x71a   :  { %v1020_v13 = vpop.xlane.xlu2 %1019 }
 0x71b   :  { %2426 = vrsqrt.f32 %v1042_v12  ;;  %v1029_v14 = vmul.f32 %v3265_v50, %v1020_v13  ;;  %vm1050_vm6 = vweird.f32 %v1042_v12 }
 0x71d   :  { %v1031_v15 = vsub.f32 %v1014_v57, %v1029_v14  ;;  %v2380_v57 = vld [vmem:[%s3503_s4] ss:$0 sm:$0xff] }
 0x71f   :  { %v1033_v16 = vmul.f32 %v1031_v15, %v1031_v15 }
 0x721   :  { %v2427_v17 = vpop.eup %2426  ;;  %v1037_v18 = vsel %vm348_vm0, %v1033_v16, 0.0 }
 0x722   :  { %v1045_v19 = vmul.f32 %v2427_v17, %v1042_v12  ;;  %1038 = vadd.xlane.f32.xlu0 %v1037_v18  ;;  %vm1051_vm5 = vweird.f32 %v2427_v17 }
 0x723   :  { %vm1052_vm7 = vmor %vm1050_vm6, %vm1051_vm5  ;;  %v1140_v56 = vpop.f32.mrf.mxu0 }
 0x724   :  { %v1046_v10 = vmul.f32 %v2427_v17, %v1045_v19  ;;  %v1141_v60 = vadd.f32 %v2381_v4, %v1140_v56 }
 0x726   :  { %v1047_v20 = vmul.f32 0.5, %v1046_v10 }
 0x728   :  { %v1048_v21 = vsub.f32 1.5, %v1047_v20 }
 0x72a   :  { %v1049_v22 = vmul.f32 %v2427_v17, %v1048_v21 }
 0x72c   :  { %v1053_v25 = vsel %vm1052_vm7, %v2427_v17, %v1049_v22 }
 0x72d   :  { %v1064_v26 = vmul.f32 %v1053_v25, %v1030_v53  ;;  %v1143_v25 = vpop.f32.mrf.mxu0 }
 0x72e   :  { %v1144_v32 = vadd.f32 %v2381_v4, %v1143_v25 }
 0x72f   :  { %v1070_v28 = vmul.f32 %v2378_v24, %v1064_v26 }
 0x731   :  { %v3281_v29 = vadd.f32 %v2379_v27, %v1070_v28 }
 0x733   :  { %2221 = vmatmul.msk.f32.vlgmr.msrb.gmra.mxu3 %vm348_vm0, %v3281_v29 }
 0x739   :  { %v1224_v5 = vpop.f32.mrf.mxu2 }
 0x73a   :  { %v1225_v12 = vadd.f32 %v2383_v7, %v1224_v5 }
 0x741   :  { %v1227_v14 = vpop.f32.mrf.mxu2 }
 0x742   :  { %v1228_v17 = vadd.f32 %v2383_v7, %v1227_v14 }
 0x749   :  { %v1230_v10 = vpop.f32.mrf.mxu2 }
 0x74a   :  { %v1231_v28 = vadd.f32 %v2383_v7, %v1230_v10 }
 0x795   :  { %v1039_v33 = vpop.xlane.xlu0 %1038 }
 0x796   :  { %v1041_v34 = vmul.f32 %v1039_v33, %v3265_v50  ;;  %v1182_v33 = vpop.f32.mrf.mxu1 }
 0x798   :  { %v1043_v37 = vadd.f32 1e-05, %v1041_v34 }
 0x79a   :  { %2428 = vrsqrt.f32 %v1043_v37  ;;  %vm1060_vm9 = vweird.f32 %v1043_v37 }
 0x7a0   :  { %v2429_v43 = vpop.eup %2428 }
 0x7a1   :  { %v1055_v44 = vmul.f32 %v2429_v43, %v1043_v37  ;;  %vm1061_vm8 = vweird.f32 %v2429_v43  ;;  %v1183_v37 = vadd.f32 %v2382_v58, %v1182_v33 }
 0x7a2   :  { %vm1062_vm10 = vmor %vm1060_vm9, %vm1061_vm8 }
 0x7a3   :  { %v1056_v45 = vmul.f32 %v2429_v43, %v1055_v44 }
 0x7a5   :  { %v1057_v46 = vmul.f32 0.5, %v1056_v45 }
 0x7a7   :  { %v1058_v47 = vsub.f32 1.5, %v1057_v46 }
 0x7a9   :  { %v1059_v49 = vmul.f32 %v2429_v43, %v1058_v47 }
 0x7ab   :  { %v1063_v51 = vsel %vm1062_vm10, %v2429_v43, %v1059_v49 }
 0x7ac   :  { %v1065_v52 = vmul.f32 %v1063_v51, %v1031_v15 }
 0x7ae   :  { %v1071_v53 = vmul.f32 %v2378_v24, %v1065_v52  ;;  %v1233_v24 = vpop.f32.mrf.mxu2 }
 0x7af   :  { %v1234_v26 = vadd.f32 %v2383_v7, %v1233_v24 }
 0x7b0   :  { %v3294_v55 = vadd.f32 %v2379_v27, %v1071_v53 }
 0x7b2   :  { %2222 = vmatmul.msk.f32.gmra.mxu3 %vm348_vm0, %v3294_v55 }
 0x7b6   :  { %v1109_v61 = vpop.f32.mrf.mxu3 }
 0x7b7   :  { %v1110_v62 = vadd.f32 %v2380_v57, %v1109_v61 }
 0x7b9   :  { %v1146_v1 = vadd.f32 %v1141_v60, %v1110_v62 }
 0x7ba   :  { %2231 = vmatmul.msk.f32.vlgmr.msra.gmra.mxu3 %vm348_vm0, %v332_v0 }
 0x7bb   :  { %v1185_v2 = vadd.f32 %v1180_v63, %v1146_v1 }
 0x7bd   :  { %1323 = vrot.lane.b32.xlu0 %v1185_v2, %s2845_s25 }
 0x7c2   :  { %2232 = vmatmul.msk.f32.gmra.mxu3 %vm348_vm0, %v333_v3 }
 0x7ca   :  { %2233 = vmatmul.msk.f32.gmra.mxu3 %vm348_vm0, %v334_v9 }
 0x7d2   :  { %2234 = vmatmul.msk.f32.gmra.mxu3 %vm348_vm0, %v335_v23 }
 0x82f   :  { %v1324_v40 = vpop.permute.xlu0 %1323 }
 0x835   :  { %v1112_v6 = vpop.f32.mrf.mxu3 }
 0x836   :  { %v1113_v31 = vadd.f32 %v2380_v57, %v1112_v6 }
 0x838   :  { %v1147_v36 = vadd.f32 %v1144_v32, %v1113_v31 }
 0x83a   :  { %v3338_v38 = vadd.f32 %v1183_v37, %v1147_v36 }
 0x83d   :  { %v1273_v13 = vpop.f32.mrf.mxu3 }
 0x83e   :  { %v1274_v15 = vadd.f32 %v2384_v8, %v1273_v13 }
 0x840   :  { %v1285_v16 = vadd.f32 %v1274_v15, %v1225_v12 }
 0x842   :  { %1357 = vrot.lane.b32.xlu0 %v1285_v16, %s2847_s18  ;;  %1325 = vrot.lane.b32.xlu1 %v1285_v16, %s2845_s25 }
 0x845   :  { %v1276_v18 = vpop.f32.mrf.mxu3 }
 0x846   :  { %v1277_v19 = vadd.f32 %v2384_v8, %v1276_v18 }
 0x848   :  { %v1286_v20 = vadd.f32 %v1277_v19, %v1228_v17 }
 0x84a   :  { %1359 = vrot.lane.b32.xlu2 %v1286_v20, %s2847_s18  ;;  %2235 = vmatpush.xpose.msk.msrb.mxu0 %vm699_vm2, %v1286_v20  ;;  %v3317_v21 = vpack.i.bf16 %v1285_v16, %v1286_v20 }
 0x84b   :  { %1327 = vrot.lane.b32.xlu0 %v1286_v20, %s2845_s25  ;;  %1389 = vrot.lane.b32.xlu1 %v1285_v16, %s2849_s14 }
 0x84d   :  { %v1279_v22 = vpop.f32.mrf.mxu3 }
 0x84e   :  { %2236 = vmatpush.xpose.msk.msrb.mxu0 %vm699_vm2, %v1285_v16  ;;  %v1280_v11 = vadd.f32 %v2384_v8, %v1279_v22 }
 0x850   :  { %v3327_v35 = vadd.f32 %v1280_v11, %v1231_v28 }
 0x851   :  { %2237 = vmatmul.msk.f32.vlgmr.msrb.gmra.mxu0 %vm699_vm2, %v1185_v2 }
 0x852   :  { %1387 = vrot.lane.b32.xlu2 %v1185_v2, %s2849_s14 }
 0x853   :  { %1391 = vrot.lane.b32.xlu0 %v1286_v20, %s2849_s14 }
 0x855   :  { %v1282_v27 = vpop.f32.mrf.mxu3 }
 0x856   :  { %v1283_v30 = vadd.f32 %v2384_v8, %v1282_v27 }
 0x858   :  { %v3325_v34 = vadd.f32 %v1283_v30, %v1234_v26 }
 0x85a   :  { %2251 = vmatpush.xpose.msk.msrb.mxu2 %vm699_vm2, %v3325_v34  ;;  %2341 = vrot.lane.b32.xlu2 %v3317_v21, %s2852_s26 }
 0x85b   :  { %1355 = vrot.lane.b32.xlu0 %v1185_v2, %s2847_s18  ;;  %1631 = vrot.lane.b32.xlu1 %v3325_v34, %s2845_s25 }
 0x85e   :  { %2252 = vmatpush.xpose.msk.msrb.mxu2 %vm699_vm2, %v3327_v35 }
 0x861   :  { %2253 = vmatmul.msk.f32.vlgmr.msrb.gmra.mxu2 %vm699_vm2, %v3338_v38 }
 0x8a4   :  { %v1360_v39 = vpop.permute.xlu2 %1359 }
 0x8a5   :  { %2241 = vmatpush.xpose.msk.msra.mxu0 %vm699_vm2, %v1360_v39 }
 0x8ac   :  { %v1388_v42 = vpop.permute.xlu2 %1387 }
 0x8b4   :  { %v1358_v41 = vpop.permute.xlu0 %1357  ;;  %v1326_v43 = vpop.permute.xlu1 %1325 }
 0x8b5   :  { %2242 = vmatpush.xpose.msk.msra.mxu0 %vm699_vm2, %v1358_v41  ;;  %v2342_v46 = vpop.permute.xlu2 %2341 }
 0x8b6   :  { %v2343_v48 = vunpack.i.l.bf16 %v2342_v46  ;;  %v2344_v49 = vunpack.i.h.bf16 %v2342_v46 }
 0x8bd   :  { %v1328_v44 = vpop.permute.xlu0 %1327  ;;  %v1390_v47 = vpop.permute.xlu1 %1389 }
 0x8be   :  { %2238 = vmatpush.xpose.msk.msrb.mxu1 %vm699_vm2, %v1328_v44 }
 0x8c2   :  { %2239 = vmatpush.xpose.msk.msrb.mxu1 %vm699_vm2, %v1326_v43 }
 0x8c5   :  { %2240 = vmatmul.msk.f32.vlgmr.msrb.gmra.mxu1 %vm699_vm2, %v1324_v40  ;;  %v1392_v45 = vpop.permute.xlu0 %1391 }
 0x8c6   :  { %2244 = vmatpush.xpose.msk.msra.mxu1 %vm699_vm2, %v1392_v45 }
 0x8ca   :  { %2245 = vmatpush.xpose.msk.msra.mxu1 %vm699_vm2, %v1390_v47 }
 0x8cd   :  { %2246 = vmatmul.msk.f32.vlgmr.msra.gmra.mxu1 %vm699_vm2, %v1388_v42  ;;  %v1356_v51 = vpop.permute.xlu0 %1355  ;;  %v1632_v53 = vpop.permute.xlu1 %1631 }
 0x8ce   :  { %1519 = vmatpush.msrb.mxu1 %v2343_v48  ;;  %2243 = vmatmul.msk.f32.vlgmr.msra.gmra.mxu0 %vm699_vm2, %v1356_v51  ;;  %v1320_v52 = vpop.f32.mrf.mxu0 }
 0x8cf   :  { %v1419_v54 = vmul.f32 0.25, %v1320_v52  ;;  %2254 = vmatpush.xpose.msk.msrb.mxu3 %vm699_vm2, %v1632_v53 }
 0x8d0   :  { %1520 = vmatpush.msrb.mxu1 %v2344_v49 }
 0x8d1   :  { %v1423_v4 = vsel %vm699_vm2, %v1419_v54, -inf }
 0x8d2   :  { %1424 = vmax.xlane.f32.xlu1 %v1423_v4 }
 0x942   :  { %v1352_v56 = vpop.f32.mrf.mxu1 }
 0x943   :  { %v1420_v57 = vmul.f32 0.25, %v1352_v56 }
 0x945   :  { %v1426_v58 = vsel %vm699_vm2, %v1420_v57, -inf  ;;  %v1425_v1 = vpop.xlane.xlu1 %1424 }
 0x946   :  { %1427 = vmax.xlane.f32.xlu0 %v1426_v58  ;;  %v1435_v2 = vsub.f32 %v1419_v54, %v1425_v1 }
 0x948   :  { %v1439_v3 = vmul.f32 1.442695, %v1435_v2 }
 0x94a   :  { %v1416_v59 = vpop.f32.mrf.mxu1  ;;  %2430 = vpow2.f32 %v1439_v3  ;;  %v1624_v3 = vpop.f32.mrf.mxu2 }
 0x94b   :  { %v1422_v60 = vmul.f32 0.25, %v1416_v59  ;;  %v1384_v61 = vpop.f32.mrf.mxu0 }
 0x94c   :  { %v1421_v62 = vmul.f32 0.25, %v1384_v61 }
 0x94d   :  { %v1432_v63 = vsel %vm699_vm2, %v1422_v60, -inf }
 0x94e   :  { %1433 = vmax.xlane.f32.xlu1 %v1432_v63  ;;  %v1429_v0 = vsel %vm699_vm2, %v1421_v62, -inf }
 0x94f   :  { %1430 = vmax.xlane.f32.xlu2 %v1429_v0 }
 0x950   :  { %v2431_v9 = vpop.eup %2430 }
 0x951   :  { %v1447_v23 = vsel %vm699_vm2, %v2431_v9, 0.0 }
 0x95a   :  { %2336 = vrot.lane.b32.xlu0 %v3317_v21, %s2855_s20 }
 0x967   :  { %1629 = vrot.lane.b32.xlu1 %v3327_v35, %s2845_s25  ;;  %2346 = vrot.lane.b32.xlu2 %v3317_v21, %s2853_s28 }
 0x96f   :  { %1627 = vrot.lane.b32.xlu1 %v3338_v38, %s2845_s25  ;;  %1663 = vrot.lane.b32.xlu2 %v3325_v34, %s2847_s18  ;;  %s3510_s25 = sld [smem:[#allocation44_spill]] }
 0x977   :  { %2351 = vrot.lane.b32.xlu1 %v3317_v21, %s2854_s6  ;;  %1661 = vrot.lane.b32.xlu2 %v3327_v35, %s2847_s18 }
 0x97f   :  { %1695 = vrot.lane.b32.xlu1 %v3325_v34, %s2849_s14 }
 0x984   :  { %1448 = vadd.xlane.f32.xlu0 %v1447_v23  ;;  %v1723_v23 = vmul.f32 0.25, %v1624_v3 }
 0x987   :  { %1693 = vrot.lane.b32.xlu1 %v3327_v35, %s2849_s14 }
 0x9b9   :  { %v1428_v5 = vpop.xlane.xlu0 %1427 }
 0x9ba   :  { %v1436_v6 = vsub.f32 %v1420_v57, %v1428_v5 }
 0x9bc   :  { %v1441_v7 = vmul.f32 1.442695, %v1436_v6  ;;  %v1727_v6 = vsel %vm699_vm2, %v1723_v23, -inf }
 0x9be   :  { %2432 = vpow2.f32 %v1441_v7 }
 0x9c1   :  { %v1434_v8 = vpop.xlane.xlu1 %1433 }
 0x9c2   :  { %v1438_v12 = vsub.f32 %v1422_v60, %v1434_v8  ;;  %v1431_v13 = vpop.xlane.xlu2 %1430 }
 0x9c3   :  { %v1437_v14 = vsub.f32 %v1421_v62, %v1431_v13 }
 0x9c4   :  { %v2433_v15 = vpop.eup %2432  ;;  %v1445_v16 = vmul.f32 1.442695, %v1438_v12 }
 0x9c5   :  { %v1443_v17 = vmul.f32 1.442695, %v1437_v14  ;;  %v1450_v18 = vsel %vm699_vm2, %v2433_v15, 0.0  ;;  %v2360_v14 = vpack.i.bf16 %v3327_v35, %v3325_v34 }
 0x9c6   :  { %2434 = vpow2.f32 %v1445_v16  ;;  %1451 = vadd.xlane.f32.xlu2 %v1450_v18 }
 0x9c7   :  { %2436 = vpow2.f32 %v1443_v17 }
 0x9ca   :  { %v2347_v21 = vpop.permute.xlu2 %2346 }
 0x9cb   :  { %v2348_v27 = vunpack.i.l.bf16 %v2347_v21  ;;  %v2349_v28 = vunpack.i.h.bf16 %v2347_v21 }
 0x9cc   :  { %v2435_v19 = vpop.eup %2434  ;;  %v2337_v10 = vpop.permute.xlu0 %2336 }
 0x9cd   :  { %v2437_v20 = vpop.eup %2436  ;;  %v2338_v22 = vunpack.i.l.bf16 %v2337_v10  ;;  %v1456_v24 = vsel %vm699_vm2, %v2435_v19, 0.0  ;;  %v2339_v26 = vunpack.i.h.bf16 %v2337_v10 }
 0x9ce   :  { %1457 = vadd.xlane.f32.xlu0 %v1456_v24  ;;  %v1453_v25 = vsel %vm699_vm2, %v2437_v20, 0.0 }
 0x9cf   :  { %1454 = vadd.xlane.f32.xlu2 %v1453_v25  ;;  %1490 = vmatpush.msrb.mxu0 %v2338_v22 }
 0x9d1   :  { %1491 = vmatpush.msrb.mxu0 %v2339_v26 }
 0x9d2   :  { %v1664_v37 = vpop.permute.xlu2 %1663 }
 0x9d3   :  { %1548 = vmatpush.msra.mxu0 %v2348_v27 }
 0x9d5   :  { %1549 = vmatpush.msra.mxu0 %v2349_v28 }
 0x9d9   :  { %v1630_v11 = vpop.permute.xlu1 %1629 }
 0x9da   :  { %2255 = vmatpush.xpose.msk.msrb.mxu3 %vm699_vm2, %v1630_v11  ;;  %v1662_v41 = vpop.permute.xlu2 %1661 }
 0x9e1   :  { %v1628_v30 = vpop.permute.xlu1 %1627 }
 0x9e2   :  { %1691 = vrot.lane.b32.xlu0 %v3338_v38, %s2849_s14  ;;  %2256 = vmatmul.msk.f32.vlgmr.msrb.gmra.mxu3 %vm699_vm2, %v1628_v30 }
 0x9e7   :  { %1659 = vrot.lane.b32.xlu2 %v3338_v38, %s2847_s18  ;;  %s3512_s18 = sld [smem:[#allocation45_spill]] }
 0x9e9   :  { %v2352_v31 = vpop.permute.xlu1 %2351 }
 0x9ea   :  { %v2353_v32 = vunpack.i.l.bf16 %v2352_v31  ;;  %v2354_v33 = vunpack.i.h.bf16 %v2352_v31 }
 0x9ec   :  { %1577 = vmatpush.msra.mxu1 %v2353_v32 }
 0x9ee   :  { %1578 = vmatpush.msra.mxu1 %v2354_v33 }
 0x9f1   :  { %v1696_v38 = vpop.permute.xlu1 %1695 }
 0x9f7   :  { %v1449_v36 = vpop.xlane.xlu0 %1448 }
 0x9f8   :  { %2438 = vrcp.f32 %v1449_v36 }
 0x9f9   :  { %v1694_v47 = vpop.permute.xlu1 %1693 }
 0x9fe   :  { %v2439_v39 = vpop.eup %2438 }
 0x9ff   :  { %v1463_v40 = vmul.f32 %v2439_v39, %v2431_v9 }
 0xa01   :  { %2247 = vmatmul.msk.f32.vlgmr.msrb.gmra.mxu0 %vm699_vm2, %v1463_v40 }
 0xa02   :  { %2257 = vmatpush.xpose.msk.msrb.mxu0 %vm699_vm2, %v1664_v37 }
 0xa06   :  { %2258 = vmatpush.xpose.msk.msrb.mxu0 %vm699_vm2, %v1662_v41 }
 0xa39   :  { %v1452_v42 = vpop.xlane.xlu2 %1451 }
 0xa3a   :  { %2440 = vrcp.f32 %v1452_v42 }
 0xa40   :  { %v2441_v43 = vpop.eup %2440 }
 0xa41   :  { %v1464_v44 = vmul.f32 %v2441_v43, %v2433_v15  ;;  %v1458_v45 = vpop.xlane.xlu0 %1457  ;;  %v1291_v43 = vld [vmem:[#allocation19 + $0x10] sm:$0xff] }
 0xa42   :  { %2442 = vrcp.f32 %v1458_v45  ;;  %v1455_v46 = vpop.xlane.xlu2 %1454  ;;  %v1289_v45 = vld [vmem:[#allocation19] sm:$0xff] }
 0xa43   :  { %2444 = vrcp.f32 %v1455_v46  ;;  %2248 = vmatmul.msk.f32.vlgmr.msrb.gmra.mxu1 %vm699_vm2, %v1464_v44  ;;  %v1290_v44 = vld [vmem:[#allocation19 + $0x8] sm:$0xff] }
 0xa44   :  { %2260 = vmatpush.xpose.msk.msrb.mxu1 %vm699_vm2, %v1696_v38  ;;  %v1292_v38 = vld [vmem:[#allocation19 + $0x18] sm:$0xff] }
 0xa48   :  { %v2443_v48 = vpop.eup %2442  ;;  %2261 = vmatpush.xpose.msk.msrb.mxu1 %vm699_vm2, %v1694_v47 }
 0xa49   :  { %v2445_v49 = vpop.eup %2444  ;;  %v1466_v51 = vmul.f32 %v2443_v48, %v2435_v19 }
 0xa4a   :  { %v1465_v52 = vmul.f32 %v2445_v49, %v2437_v20  ;;  %v1660_v53 = vpop.permute.xlu2 %1659 }
 0xa4b   :  { %2250 = vmatmul.msk.f32.vlgmr.msra.gmra.mxu1 %vm699_vm2, %v1466_v51 }
 0xa4c   :  { %2249 = vmatmul.msk.f32.vlgmr.msra.gmra.mxu0 %vm699_vm2, %v1465_v52 }
 0xa54   :  { %v1692_v54 = vpop.permute.xlu0 %1691  ;;  %2259 = vmatmul.msk.f32.vlgmr.msrb.gmra.mxu0 %vm699_vm2, %v1660_v53 }
 0xa55   :  { %2262 = vmatmul.msk.f32.vlgmr.msrb.gmra.mxu1 %vm699_vm2, %v1692_v54 }
 0xa65   :  { %v1656_v4 = vpop.f32.mrf.mxu3 }
 0xa66   :  { %v1724_v56 = vmul.f32 0.25, %v1656_v4 }
 0xa68   :  { %v1730_v57 = vsel %vm699_vm2, %v1724_v56, -inf }
 0xa69   :  { %1731 = vmax.xlane.f32.xlu1 %v1730_v57 }
 0xa7e   :  { %v3395_v59 = vpop.f32.mrf.mxu0 }
 0xac0   :  { %v1522_v58 = vpop.f32.mrf.mxu1 }
 0xac8   :  { %v1580_v61 = vpop.f32.mrf.mxu1 }
 0xac9   :  { %v3397_v60 = vpop.f32.mrf.mxu0 }
 0xad1   :  { %v1688_v62 = vpop.f32.mrf.mxu0 }
 0xad2   :  { %v1725_v63 = vmul.f32 0.25, %v1688_v62  ;;  %v1720_v0 = vpop.f32.mrf.mxu1 }
 0xad3   :  { %v1726_v1 = vmul.f32 0.25, %v1720_v0 }
 0xad4   :  { %v1733_v2 = vsel %vm699_vm2, %v1725_v63, -inf }
 0xad5   :  { %1734 = vmax.xlane.f32.xlu2 %v1733_v2  ;;  %v1736_v9 = vsel %vm699_vm2, %v1726_v1, -inf }
 0xad6   :  { %1737 = vmax.xlane.f32.xlu0 %v1736_v9 }
 0xadc   :  { %v1732_v5 = vpop.xlane.xlu1 %1731 }
 0xadd   :  { %v1740_v7 = vsub.f32 %v1724_v56, %v1732_v5  ;;  %1728 = vmax.xlane.f32.xlu2 %v1727_v6  ;;  %v2385_v5 = vld [vmem:[%s3508_s30] ss:$0 sm:$0xff] }
 0xadf   :  { %v1745_v8 = vmul.f32 1.442695, %v1740_v7 }
 0xae1   :  { %2446 = vpow2.f32 %v1745_v8 }
 0xae7   :  { %v2447_v12 = vpop.eup %2446 }
 0xae8   :  { %v1754_v13 = vsel %vm699_vm2, %v2447_v12, 0.0 }
 0xae9   :  { %1755 = vadd.xlane.f32.xlu1 %v1754_v13 }
 0xaea   :  { %2361 = vrot.lane.b32.xlu0 %v2360_v14, %s2853_s28 }
 0xaf2   :  { %2371 = vrot.lane.b32.xlu0 %v2360_v14, %s2855_s20 }
 0xafa   :  { %1584 = vrot.lane.b32.xlu0 %v1522_v58, %s2833_s23 }
 0xb02   :  { %2356 = vrot.lane.b32.xlu1 %v2360_v14, %s2852_s26  ;;  %1592 = vrot.lane.b32.xlu0 %v1580_v61, %s2857_s5 }
 0xb48   :  { %v1735_v15 = vpop.xlane.xlu2 %1734 }
 0xb49   :  { %v1741_v16 = vsub.f32 %v1725_v63, %v1735_v15  ;;  %v1738_v17 = vpop.xlane.xlu0 %1737 }
 0xb4a   :  { %v1742_v19 = vsub.f32 %v1726_v1, %v1738_v17 }
 0xb4b   :  { %v1747_v18 = vmul.f32 1.442695, %v1741_v16 }
 0xb4c   :  { %v1749_v10 = vmul.f32 1.442695, %v1742_v19 }
 0xb4d   :  { %2448 = vpow2.f32 %v1747_v18 }
 0xb4e   :  { %2450 = vpow2.f32 %v1749_v10 }
 0xb50   :  { %v1729_v20 = vpop.xlane.xlu2 %1728 }
 0xb51   :  { %v1739_v34 = vsub.f32 %v1723_v23, %v1729_v20 }
 0xb53   :  { %v2449_v35 = vpop.eup %2448  ;;  %v1743_v21 = vmul.f32 1.442695, %v1739_v34 }
 0xb54   :  { %v1757_v22 = vsel %vm699_vm2, %v2449_v35, 0.0  ;;  %v2451_v24 = vpop.eup %2450 }
 0xb55   :  { %2452 = vpow2.f32 %v1743_v21  ;;  %1758 = vadd.xlane.f32.xlu2 %v1757_v22  ;;  %v1760_v27 = vsel %vm699_vm2, %v2451_v24, 0.0 }
 0xb5b   :  { %v2453_v25 = vpop.eup %2452 }
 0xb5c   :  { %v2362_v26 = vpop.permute.xlu0 %2361  ;;  %v1751_v28 = vsel %vm699_vm2, %v2453_v25, 0.0  ;;  %v1756_v36 = vpop.xlane.xlu1 %1755 }
 0xb5d   :  { %v2363_v11 = vunpack.i.l.bf16 %v2362_v26  ;;  %1761 = vadd.xlane.f32.xlu2 %v1760_v27  ;;  %1752 = vadd.xlane.f32.xlu1 %v1751_v28  ;;  %v2364_v30 = vunpack.i.h.bf16 %v2362_v26  ;;  %2454 = vrcp.f32 %v1756_v36  ;;  %v1993_v26 = vld [vmem:[#allocation20 + $0x8] sm:$0xff]  ;;  %v1992_v27 = vld [vmem:[#allocation20] sm:$0xff] }
 0xb5f   :  { %1852 = vmatpush.msra.mxu0 %v2363_v11 }
 0xb61   :  { %1853 = vmatpush.msra.mxu0 %v2364_v30 }
 0xb63   :  { %v2455_v39 = vpop.eup %2454 }
 0xb64   :  { %v2372_v31 = vpop.permute.xlu0 %2371  ;;  %v1768_v42 = vmul.f32 %v2455_v39, %v2447_v12  ;;  %v2386_v39 = vld [vmem:[%s3509_s19] ss:$0 sm:$0xff] }
 0xb65   :  { %v2373_v32 = vunpack.i.l.bf16 %v2372_v31  ;;  %v2374_v33 = vunpack.i.h.bf16 %v2372_v31 }
 0xb67   :  { %1794 = vmatpush.msra.mxu2 %v2373_v32 }
 0xb69   :  { %1795 = vmatpush.msra.mxu2 %v2374_v33 }
 0xb6b   :  { %1923 = vmatpush.msrb.mxu2 %v1292_v38 }
 0xb6c   :  { %v1585_v53 = vpop.permute.xlu0 %1584 }
 0xb6d   :  { %1924 = vmatpush.msrb.mxu2 %v1291_v43  ;;  %v1595_v61 = vsel %vm425_vm1, %v3395_v59, %v1585_v53 }
 0xb6f   :  { %1925 = vmatpush.msrb.mxu2 %v1290_v44  ;;  %v2038_v44 = vld [vmem:[%s3511_s3 + $0x38] sm:$0xff] }
 0xb70   :  { %2058 = vmatpush.msrb.mxu0 %v2038_v44 }
 0xb71   :  { %1926 = vmatpush.msrb.mxu2 %v1289_v45  ;;  %v2037_v45 = vld [vmem:[%s3511_s3 + $0x30] sm:$0xff] }
 0xb72   :  { %2059 = vmatpush.msrb.mxu0 %v2037_v45  ;;  %v2391_v45 = vld [vmem:[%s3028_s27] ss:$0 sm:$0xff]  ;;  %s2139_s27 = sshll.u32 %s3033_s24, 4  ;;  %s2140_s27 = int_to_ptr.hbm [resolvable:$true] %s2139_s27 }
 0xb73   :  { %s2770_s29 = sshra.s32 %s2140_s27, 4  ;;  %s2771_s29 = int_to_ptr.hbm [resolvable:$true] %s2770_s29 }
 0xb74   :  { %v2357_v37 = vpop.permute.xlu1 %2356  ;;  %v1593_v63 = vpop.permute.xlu0 %1592  ;;  %s2772_s14 = scalar_lea.hbm %s2771_s29, 16  ;;  %p2775_p5 = scmp.lt.s32.totalorder %s2771_s29, %s3033_s24 }
 0xb75   :  { %v2358_v40 = vunpack.i.l.bf16 %v2357_v37  ;;  %2366 = vrot.lane.b32.xlu2 %v2360_v14, %s2854_s6  ;;  %v2359_v41 = vunpack.i.h.bf16 %v2357_v37  ;;  %p2773_p4 = scmp.ne.s32.totalorder %s2771_s29, %s2772_s14  ;;  %p2776_p6 = scmp.lt.s32.totalorder %s2774_s9, %s2772_s14 }
 0xb77   :  { %1823 = vmatpush.msra.mxu3 %v2358_v40  ;;  %p2777_p7 = por %p2776_p6, %p2775_p5 }
 0xb79   :  { %1824 = vmatpush.msra.mxu3 %v2359_v41  ;;  %p2778_p8 = pnand %p2777_p7, %p2773_p4 }
 0xb7a   :  { %2264 = vmatmul.msk.f32.vlgmr.msra.gmra.mxu3 %vm699_vm2, %v1768_v42  ;;  %v2387_v42 = vld [vmem:[%s3510_s25] ss:$0 sm:$0xff] }
 0xb7d   :  { %1588 = vrot.lane.b32.xlu2 %v3397_v60, %s2856_s17 }
 0xbc8   :  { %v1759_v46 = vpop.xlane.xlu2 %1758 }
 0xbc9   :  { %2456 = vrcp.f32 %v1759_v46  ;;  %v2036_v46 = vld [vmem:[%s3511_s3 + $0x28] sm:$0xff] }
 0xbca   :  { %2060 = vmatpush.msrb.mxu0 %v2036_v46 }
 0xbcf   :  { %v2457_v47 = vpop.eup %2456 }
 0xbd0   :  { %v1769_v48 = vmul.f32 %v2457_v47, %v2449_v35  ;;  %v1753_v49 = vpop.xlane.xlu1 %1752  ;;  %v1762_v51 = vpop.xlane.xlu2 %1761  ;;  %v2035_v47 = vld [vmem:[%s3511_s3 + $0x20] sm:$0xff] }
 0xbd1   :  { %2458 = vrcp.f32 %v1753_v49  ;;  %2061 = vmatpush.msrb.mxu0 %v2035_v47 }
 0xbd2   :  { %2265 = vmatmul.msk.f32.vlgmr.msra.gmra.mxu0 %vm699_vm2, %v1769_v48  ;;  %2460 = vrcp.f32 %v1762_v51  ;;  %v2034_v48 = vld [vmem:[%s3511_s3 + $0x18] sm:$0xff] }
 0xbd3   :  { %2062 = vmatpush.msrb.mxu0 %v2034_v48 }
 0xbd7   :  { %v2459_v52 = vpop.eup %2458 }
 0xbd8   :  { %v1767_v54 = vmul.f32 %v2459_v52, %v2453_v25  ;;  %v2367_v4 = vpop.permute.xlu2 %2366  ;;  %v2461_v56 = vpop.eup %2460  ;;  %v1994_v25 = vld [vmem:[#allocation20 + $0x10] sm:$0xff] }
 0xbd9   :  { %v2368_v57 = vunpack.i.l.bf16 %v2367_v4  ;;  %v2369_v58 = vunpack.i.h.bf16 %v2367_v4  ;;  %v1770_v60 = vmul.f32 %v2461_v56, %v2451_v24  ;;  %v1995_v24 = vld [vmem:[#allocation20 + $0x18] sm:$0xff]  ;;  %v2033_v4 = vld [vmem:[%s3511_s3 + $0x10] sm:$0xff] }
 0xbda   :  { %2263 = vmatmul.msk.f32.vlgmr.msra.gmra.mxu2 %vm699_vm2, %v1767_v54  ;;  %2018 = vmatpush.msrb.mxu3 %v1995_v24  ;;  %v2032_v56 = vld [vmem:[%s3511_s3 + $0x8] sm:$0xff] }
 0xbdb   :  { %1881 = vmatpush.msra.mxu1 %v2368_v57  ;;  %2063 = vmatpush.msrb.mxu0 %v2033_v4  ;;  %v2031_v57 = vld [vmem:[%s3511_s3] sm:$0xff] }
 0xbdc   :  { %2019 = vmatpush.msrb.mxu3 %v1994_v25 }
 0xbdd   :  { %1882 = vmatpush.msra.mxu1 %v2369_v58  ;;  %2064 = vmatpush.msrb.mxu0 %v2032_v56  ;;  %v2388_v58 = vld [vmem:[%s3512_s18] ss:$0 sm:$0xff] }
 0xbde   :  { %2266 = vmatmul.msk.f32.vlgmr.msra.gmra.mxu1 %vm699_vm2, %v1770_v60  ;;  %2020 = vmatpush.msrb.mxu3 %v1993_v26 }
 0xbdf   :  { %2065 = vmatpush.msrb.mxu0 %v2031_v57 }
 0xbe0   :  { %v1589_v62 = vpop.permute.xlu2 %1588  ;;  %2021 = vmatpush.msrb.mxu3 %v1992_v27 }
 0xbe1   :  { %v1596_v0 = vsel %vm699_vm2, %v1595_v61, %v1589_v62 }
 0xbe2   :  { %v1597_v1 = vsel %vm701_vm3, %v1596_v0, %v1593_v63 }
 0xbe3   :  { %2267 = vmatmul.msk.f32.vlgmr.msrb.gmra.mxu2 %vm348_vm0, %v1597_v1 }
 0xbfd   :  { %v1826_v2 = vpop.f32.mrf.mxu3 }
 0xbfe   :  { %1888 = vrot.lane.b32.xlu2 %v1826_v2, %s2833_s23 }
 0xc4f   :  { %v1855_v3 = vpop.f32.mrf.mxu0 }
 0xc50   :  { %1892 = vrot.lane.b32.xlu0 %v1855_v3, %s2856_s17 }
 0xc58   :  { %v1889_v12 = vpop.permute.xlu2 %1888 }
 0xc5b   :  { %v1884_v9 = vpop.f32.mrf.mxu1 }
 0xc5c   :  { %1896 = vrot.lane.b32.xlu2 %v1884_v9, %s2857_s5 }
 0xc5d   :  { %v1797_v23 = vpop.f32.mrf.mxu2 }
 0xc5e   :  { %v1899_v13 = vsel %vm425_vm1, %v1797_v23, %v1889_v12 }
 0xc66   :  { %v1928_v59 = vpop.f32.mrf.mxu2 }
 0xc67   :  { %v1929_v6 = vadd.f32 %v2385_v5, %v1928_v59 }
 0xc69   :  { %v1934_v7 = vadd.f32 %v1929_v6, %v3281_v29 }
 0xc6b   :  { %v1936_v8 = vsel %vm348_vm0, %v1934_v7, 0.0 }
 0xc7a   :  { %1937 = vadd.xlane.f32.xlu0 %v1936_v8 }
 0xcb6   :  { %v1897_v15 = vpop.permute.xlu2 %1896 }
 0xcc2   :  { %v1893_v14 = vpop.permute.xlu0 %1892 }
 0xcc3   :  { %v1900_v16 = vsel %vm699_vm2, %v1899_v13, %v1893_v14  ;;  %v2389_v13 = vld [vmem:[%s3018_s13] ss:$0 sm:$0xff]  ;;  %s2859_s13 = smov [#allocation22]  }
 0xcc4   :  { %v1901_v17 = vsel %vm701_vm3, %v1900_v16, %v1897_v15 }
 0xcc5   :  { %2268 = vmatmul.msk.f32.gmra.mxu2 %vm348_vm0, %v1901_v17 }
 0xced   :  { %v1938_v18 = vpop.xlane.xlu0 %1937 }
 0xcee   :  { %v1942_v19 = vmul.f32 %v1938_v18, %v3265_v50 }
 0xcf0   :  { %v1944_v10 = vsub.f32 %v1934_v7, %v1942_v19 }
 0xcf2   :  { %v1946_v20 = vmul.f32 %v1944_v10, %v1944_v10 }
 0xcf4   :  { %v1948_v29 = vsel %vm348_vm0, %v1946_v20, 0.0 }
 0xcf5   :  { %1949 = vadd.xlane.f32.xlu1 %v1948_v29 }
 0xd48   :  { %v1931_v34 = vpop.f32.mrf.mxu2 }
 0xd49   :  { %v1932_v35 = vadd.f32 %v2385_v5, %v1931_v34 }
 0xd4b   :  { %v1935_v21 = vadd.f32 %v1932_v35, %v3294_v55 }
 0xd4d   :  { %v1939_v22 = vsel %vm348_vm0, %v1935_v21, 0.0 }
 0xd4e   :  { %1940 = vadd.xlane.f32.xlu2 %v1939_v22 }
 0xd68   :  { %v1950_v28 = vpop.xlane.xlu1 %1949 }
 0xd69   :  { %v1954_v11 = vmul.f32 %v1950_v28, %v3265_v50 }
 0xd6b   :  { %v1956_v30 = vadd.f32 1e-05, %v1954_v11 }
 0xd6d   :  { %2462 = vrsqrt.f32 %v1956_v30  ;;  %vm1964_vm12 = vweird.f32 %v1956_v30 }
 0xd73   :  { %v2463_v31 = vpop.eup %2462 }
 0xd74   :  { %v1959_v55 = vmul.f32 %v2463_v31, %v1956_v30  ;;  %vm1965_vm11 = vweird.f32 %v2463_v31 }
 0xd75   :  { %vm1966_vm13 = vmor %vm1964_vm12, %vm1965_vm11 }
 0xd76   :  { %v1960_v32 = vmul.f32 %v2463_v31, %v1959_v55 }
 0xd78   :  { %v1961_v33 = vmul.f32 0.5, %v1960_v32 }
 0xd7a   :  { %v1962_v36 = vsub.f32 1.5, %v1961_v33 }
 0xd7c   :  { %v1963_v37 = vmul.f32 %v2463_v31, %v1962_v36 }
 0xd7e   :  { %v1967_v40 = vsel %vm1966_vm13, %v2463_v31, %v1963_v37 }
 0xd7f   :  { %v1978_v41 = vmul.f32 %v1967_v40, %v1944_v10 }
 0xd81   :  { %v1984_v38 = vmul.f32 %v2386_v39, %v1978_v41 }
 0xd83   :  { %v1990_v43 = vadd.f32 %v2387_v42, %v1984_v38  ;;  %v2390_v38 = vld [vmem:[%s3023_s8] ss:$0 sm:$0xff]  ;;  %s2137_s8 = sshll.u32 %s2859_s13, 4  ;;  %s2138_s8 = int_to_ptr.vmem [resolvable:$true] %s2137_s8 }
 0xd85   :  { %2269 = vmatmul.msk.f32.vlgmr.msrb.gmra.mxu3 %vm348_vm0, %v1990_v43 }
 0xdc1   :  { %v1941_v49 = vpop.xlane.xlu2 %1940 }
 0xdc2   :  { %v1943_v51 = vmul.f32 %v1941_v49, %v3265_v50 }
 0xdc4   :  { %v1945_v52 = vsub.f32 %v1935_v21, %v1943_v51 }
 0xdc6   :  { %v1947_v53 = vmul.f32 %v1945_v52, %v1945_v52 }
 0xdc8   :  { %v1951_v54 = vsel %vm348_vm0, %v1947_v53, 0.0 }
 0xdc9   :  { %1952 = vadd.xlane.f32.xlu1 %v1951_v54 }
 0xe08   :  { %v2023_v60 = vpop.f32.mrf.mxu3 }
 0xe09   :  { %v2024_v61 = vadd.f32 %v2388_v58, %v2023_v60 }
 0xe0b   :  { %v2029_v62 = vmax.f32 %v2024_v61, 0.0 }
 0xe0d   :  { %2271 = vmatmul.msk.f32.vlgmr.msrb.gmra.mxu0 %vm2043_vm14, %v2029_v62 }
 0xe3c   :  { %v1953_v63 = vpop.xlane.xlu1 %1952 }
 0xe3d   :  { %v1955_v0 = vmul.f32 %v1953_v63, %v3265_v50 }
 0xe3f   :  { %v1957_v1 = vadd.f32 1e-05, %v1955_v0 }
 0xe41   :  { %2464 = vrsqrt.f32 %v1957_v1  ;;  %vm1974_vm1 = vweird.f32 %v1957_v1 }
 0xe47   :  { %v2465_v2 = vpop.eup %2464 }
 0xe48   :  { %v1969_v3 = vmul.f32 %v2465_v2, %v1957_v1  ;;  %vm1975_vm15 = vweird.f32 %v2465_v2 }
 0xe49   :  { %vm1976_vm2 = vmor %vm1974_vm1, %vm1975_vm15 }
 0xe4a   :  { %v1970_v9 = vmul.f32 %v2465_v2, %v1969_v3 }
 0xe4c   :  { %v1971_v23 = vmul.f32 0.5, %v1970_v9 }
 0xe4e   :  { %v1972_v5 = vsub.f32 1.5, %v1971_v23 }
 0xe50   :  { %v1973_v59 = vmul.f32 %v2465_v2, %v1972_v5 }
 0xe52   :  { %v1977_v6 = vsel %vm1976_vm2, %v2465_v2, %v1973_v59 }
 0xe53   :  { %v1979_v7 = vmul.f32 %v1977_v6, %v1945_v52 }
 0xe55   :  { %v1985_v8 = vmul.f32 %v2386_v39, %v1979_v7 }
 0xe57   :  { %v1991_v12 = vadd.f32 %v2387_v42, %v1985_v8 }
 0xe59   :  { %2270 = vmatmul.msk.f32.gmra.mxu3 %vm348_vm0, %v1991_v12 }
 0xe8a   :  { %v2067_v14 = vpop.f32.mrf.mxu0 }
 0xe8b   :  { %v2068_v15 = vadd.f32 %v2389_v13, %v2067_v14 }
 0xe8d   :  { %v2073_v16 = vadd.f32 %v2068_v15, %v1990_v43 }
 0xe8f   :  { %v2075_v17 = vsel %vm348_vm0, %v2073_v16, 0.0 }
 0xe90   :  { %2076 = vadd.xlane.f32.xlu1 %v2075_v17 }
 0xedc   :  { %v2026_v18 = vpop.f32.mrf.mxu3 }
 0xedd   :  { %v2027_v19 = vadd.f32 %v2388_v58, %v2026_v18 }
 0xedf   :  { %v2030_v10 = vmax.f32 %v2027_v19, 0.0 }
 0xee1   :  { %2272 = vmatmul.msk.f32.gmra.mxu0 %vm2043_vm14, %v2030_v10 }
 0xf03   :  { %v2077_v20 = vpop.xlane.xlu1 %2076 }
 0xf04   :  { %v2081_v34 = vmul.f32 %v2077_v20, %v3265_v50 }
 0xf06   :  { %v2083_v22 = vsub.f32 %v2073_v16, %v2081_v34 }
 0xf08   :  { %v2085_v25 = vmul.f32 %v2083_v22, %v2083_v22 }
 0xf0a   :  { %v2087_v26 = vsel %vm348_vm0, %v2085_v25, 0.0 }
 0xf5e   :  { %v2070_v29 = vpop.f32.mrf.mxu0 }
 0xf5f   :  { %v2071_v35 = vadd.f32 %v2389_v13, %v2070_v29 }
 0xf61   :  { %v2074_v21 = vadd.f32 %v2071_v35, %v1991_v12 }
 0xf63   :  { %v2078_v24 = vsel %vm348_vm0, %v2074_v21, 0.0 }
 0xf64   :  { %2079 = vadd.xlane.f32.xlu1 %v2078_v24 }
 0xf6c   :  { %2088 = vadd.xlane.f32.xlu1 %v2087_v26 }
 0xfd7   :  { %v2080_v27 = vpop.xlane.xlu1 %2079 }
 0xfd8   :  { %v2082_v28 = vmul.f32 %v2080_v27, %v3265_v50 }
 0xfda   :  { %v2084_v11 = vsub.f32 %v2074_v21, %v2082_v28 }
 0xfdc   :  { %v2086_v30 = vmul.f32 %v2084_v11, %v2084_v11 }
 0xfde   :  { %v2090_v31 = vsel %vm348_vm0, %v2086_v30, 0.0 }
 0xfdf   :  { %2091 = vadd.xlane.f32.xlu0 %v2090_v31  ;;  %v2089_v55 = vpop.xlane.xlu1 %2088 }
 0xfe0   :  { %v2093_v32 = vmul.f32 %v2089_v55, %v3265_v50 }
 0xfe2   :  { %v2095_v33 = vadd.f32 1e-05, %v2093_v32 }
 0xfe4   :  { %2466 = vrsqrt.f32 %v2095_v33  ;;  %vm2103_vm4 = vweird.f32 %v2095_v33 }
 0xfea   :  { %v2467_v36 = vpop.eup %2466 }
 0xfeb   :  { %v2098_v37 = vmul.f32 %v2467_v36, %v2095_v33  ;;  %vm2104_vm3 = vweird.f32 %v2467_v36 }
 0xfec   :  { %vm2105_vm5 = vmor %vm2103_vm4, %vm2104_vm3 }
 0xfed   :  { %v2099_v39 = vmul.f32 %v2467_v36, %v2098_v37 }
 0xfef   :  { %v2100_v40 = vmul.f32 0.5, %v2099_v39 }
 0xff1   :  { %v2101_v41 = vsub.f32 1.5, %v2100_v40 }
 0xff3   :  { %v2102_v42 = vmul.f32 %v2467_v36, %v2101_v41 }
 0xff5   :  { %v2106_v43 = vsel %vm2105_vm5, %v2467_v36, %v2102_v42 }
 0xff6   :  { %v2117_v44 = vmul.f32 %v2106_v43, %v2083_v22 }
 0xff8   :  { %v2123_v46 = vmul.f32 %v2390_v38, %v2117_v44 }
 0xffa   :  { %v2129_v47 = vadd.f32 %v2391_v45, %v2123_v46 }
 0xffc   :  { %2131 = vst.msk [vmem:[#allocation22] sm:$0xff] %vm348_vm0, %v2129_v47 }
0x1052   :  { %v2092_v48 = vpop.xlane.xlu0 %2091 }
0x1053   :  { %v2094_v49 = vmul.f32 %v2092_v48, %v3265_v50 }
0x1055   :  { %v2096_v51 = vadd.f32 1e-05, %v2094_v49 }
0x1057   :  { %2468 = vrsqrt.f32 %v2096_v51  ;;  %vm2113_vm7 = vweird.f32 %v2096_v51 }
0x105d   :  { %v2469_v52 = vpop.eup %2468 }
0x105e   :  { %v2108_v53 = vmul.f32 %v2469_v52, %v2096_v51  ;;  %vm2114_vm6 = vweird.f32 %v2469_v52 }
0x105f   :  { %vm2115_vm8 = vmor %vm2113_vm7, %vm2114_vm6 }
0x1060   :  { %v2109_v54 = vmul.f32 %v2469_v52, %v2108_v53 }
0x1062   :  { %v2110_v4 = vmul.f32 0.5, %v2109_v54 }
0x1064   :  { %v2111_v56 = vsub.f32 1.5, %v2110_v4 }
0x1066   :  { %v2112_v57 = vmul.f32 %v2469_v52, %v2111_v56 }
0x1068   :  { %v2116_v58 = vsel %vm2115_vm8, %v2469_v52, %v2112_v57 }
0x1069   :  { %v2118_v60 = vmul.f32 %v2116_v58, %v2084_v11 }
0x106b   :  { %v2124_v50 = vmul.f32 %v2390_v38, %v2118_v60 }
0x106d   :  { %v2130_v61 = vadd.f32 %v2391_v45, %v2124_v50 }
0x106f   :  { %2132 = vst.msk [vmem:[#allocation22 + $0x8] sm:$0xff] %vm348_vm0, %v2130_v61 }
0x1070   :  { %2781 = shalt.err (!%p2778_p8)
}
0x1071   :  { %2145 = dma.vmem_to_hbm [thread:$0]  %s2138_s8, 256, %s2140_s27, [#allocation4], %s2832_s22, %s2832_s22, %s2833_s23  }
0x1072   :  { %2796 = dma.done.wait [#allocation4], 256  }
0x1073   :  { %2797 = vsyncadd [#allocation4], 4294967040 }
0x1074   :  { %2150 = vsyncpa [#allocation3], 1 }
0x1075   :  { %2151 = vsyncpa [#allocation6], 1 }
0x1076   :  { %2152 = vsyncpa [#allocation9], 1 }
0x1077   :  { %2153 = vsyncpa [#allocation12], 1 }
0x1078   :  { %2154 = vsyncpa [#allocation15], 1 }
0x1079   :  { %2155 = vsyncpa [#allocation18], 1 }
0x107a   :  { %2156 = vsyncpa [#allocation21], 1 }
0x107b   :  { %2157 = vsyncpa [#allocation4], 1 }

</bundles_post_ra>
